<compile_context>
chip_gen: v6e
topology: v6e:2x2x1
jax: 0.10.0
libtpu: 0.0.40
codegen_flags: <defaults>
</compile_context>

<pallas_src>
import jax
import jax.numpy as jnp
from jax.experimental import pallas as pl
from jax.experimental.pallas import tpu as pltpu

BN_EPS = 1e-5
LANES = 128


def _round_up(n, m):
    return pl.cdiv(n, m) * m


def _bn_relu_train(h, gamma, beta):
    """Training-mode BatchNorm1d (biased variance, two-pass stats) + ReLU, f32."""
    inv_b = 1.0 / h.shape[0]
    mean = jnp.sum(h, axis=0, keepdims=True) * inv_b
    d = h - mean
    var = jnp.sum(d * d, axis=0, keepdims=True) * inv_b
    y = d * jax.lax.rsqrt(var + BN_EPS) * gamma + beta
    return jnp.maximum(y, 0.0)


def discriminator_kernel(
    x_ref,
    w1_ref, g1_ref, be1_ref,
    w2_ref, g2_ref, be2_ref,
    w3_ref, b3_ref,
    o_ref,
):
    # ---- Layer 1: Linear (bias cancels inside training-mode BN) + BN + ReLU ----
    x = x_ref[...].astype(jnp.bfloat16)  # no-op if the caller already passes bf16
    h1 = jnp.dot(x, w1_ref[...], preferred_element_type=jnp.float32)
    h1 = _bn_relu_train(h1, g1_ref[...], be1_ref[...])

    # ---- Layer 2: Linear (bias cancels) + BN + ReLU ----
    h2 = jnp.dot(h1.astype(jnp.bfloat16), w2_ref[...],
                 preferred_element_type=jnp.float32)
    h2 = _bn_relu_train(h2, g2_ref[...], be2_ref[...])

    # ---- Layer 3: Linear -> lane-dense (B, 128*k) logits tile ----
    out = jnp.dot(h2.astype(jnp.bfloat16), w3_ref[...],
                  preferred_element_type=jnp.float32) + b3_ref[...]
    o_ref[...] = out.astype(o_ref.dtype)


def prepare_params(raw):
    """One-time (hoisted) prep: bf16 weights + 128-lane zero padding.

    Padded columns carry exact zeros through Linear -> BN -> ReLU
    ((0 - 0) * rsqrt(0 + eps) * 1 + 0 = 0 with gamma pad = 1, beta pad = 0),
    so the kernel body needs no masking.
    """
    in_f, h1 = raw["w1"].shape
    h2 = raw["w2"].shape[1]
    nd = raw["w3"].shape[1]
    h1p, h2p, ndp = _round_up(h1, LANES), _round_up(h2, LANES), _round_up(nd, LANES)

    def pad2(a, shape, dtype, fill=0.0):
        out = jnp.full(shape, fill, dtype)
        return out.at[: a.shape[0], : a.shape[1]].set(a.astype(dtype))

    return {
        "w1": pad2(raw["w1"], (in_f, h1p), jnp.bfloat16),
        "g1": pad2(raw["g1"], (1, h1p), jnp.float32, fill=1.0),
        "be1": pad2(raw["be1"], (1, h1p), jnp.float32),
        "w2": pad2(raw["w2"], (h1p, h2p), jnp.bfloat16),
        "g2": pad2(raw["g2"], (1, h2p), jnp.float32, fill=1.0),
        "be2": pad2(raw["be2"], (1, h2p), jnp.float32),
        "w3": pad2(raw["w3"], (h2p, ndp), jnp.bfloat16),
        "b3": pad2(raw["b3"], (1, ndp), jnp.float32),
    }


def build_discriminator(raw_params, batch, x_dtype=jnp.float32):
    """Returns a jit-cached forward(x). All weight prep is hoisted to build time."""
    prepared = prepare_params(raw_params)
    num_domains = raw_params["w3"].shape[1]
    in_features = raw_params["w1"].shape[0]
    h1p = prepared["w1"].shape[1]
    h2p = prepared["w2"].shape[1]
    ndp = prepared["w3"].shape[1]

    # Whole batch + weights + activations are VMEM-resident; size the scoped-VMEM
    # limit with 2x headroom, capped at 64 MiB so it is valid on v7x as well.
    x_itemsize = jnp.dtype(x_dtype).itemsize
    est = (
        batch * (in_features * x_itemsize + 4 * (h1p + h2p + ndp))
        + 2 * (in_features * h1p + h1p * h2p + h2p * ndp)
        + 4 * (2 * h1p + 2 * h2p + ndp)
    )
    vmem_limit = int(min(max(2 * est, 16 * 2 ** 20), 64 * 2 ** 20))

    vmem = pltpu.MemorySpace.VMEM
    weight_order = ("w1", "g1", "be1", "w2", "g2", "be2", "w3", "b3")

    call = pl.pallas_call(
        discriminator_kernel,
        out_shape=jax.ShapeDtypeStruct((batch, ndp), jnp.float32),
        in_specs=[pl.BlockSpec(memory_space=vmem)] * (1 + len(weight_order)),
        out_specs=pl.BlockSpec(memory_space=vmem),
        compiler_params=pltpu.CompilerParams(vmem_limit_bytes=vmem_limit),
    )

    @jax.jit
    def forward(x):
        out = call(x, *(prepared[k] for k in weight_order))
        return out[:, :num_domains]

    return forward


def init_params(key, in_features, hidden_dim, num_domains):
    """PyTorch-style uniform fan-in init. Weights stored as (in, out), f32."""
    h2 = hidden_dim // 2

    def linear_init(k, fan_in, fan_out):
        kw, kb = jax.random.split(k)
        bound = 1.0 / jnp.sqrt(float(fan_in))
        w = jax.random.uniform(kw, (fan_in, fan_out), jnp.float32, -bound, bound)
        b = jax.random.uniform(kb, (1, fan_out), jnp.float32, -bound, bound)
        return w, b

    k1, k2, k3 = jax.random.split(key, 3)
    w1, b1 = linear_init(k1, in_features, hidden_dim)
    w2, b2 = linear_init(k2, hidden_dim, h2)
    w3, b3 = linear_init(k3, h2, num_domains)

    return {
        # b1/b2 kept for parity with the PyTorch parameter layout even though the
        # kernel skips them (they cancel inside training-mode BatchNorm).
        "w1": w1, "b1": b1,
        "g1": jnp.ones((1, hidden_dim), jnp.float32),
        "be1": jnp.zeros((1, hidden_dim), jnp.float32),
        "w2": w2, "b2": b2,
        "g2": jnp.ones((1, h2), jnp.float32),
        "be2": jnp.zeros((1, h2), jnp.float32),
        "w3": w3, "b3": b3,
    }


def reference_forward(x, params):
    """Pure-JAX reference mirroring the PyTorch forward (BN in training mode).

    Dot operands are cast to bf16 (f32 accumulation) to mirror the kernel's MXU
    precision so the comparison isolates kernel correctness, not dtype choice.
    Linear biases b1/b2 are included here to verify they cancel inside BN.
    """
    def dot_bf16(a, w):
        return jnp.dot(a.astype(jnp.bfloat16), w.astype(jnp.bfloat16),
                       preferred_element_type=jnp.float32)

    def bn(h, g, b):
        mean = jnp.mean(h, axis=0, keepdims=True)
        var = jnp.mean((h - mean) ** 2, axis=0, keepdims=True)
        return (h - mean) * jax.lax.rsqrt(var + BN_EPS) * g + b

    h = dot_bf16(x, params["w1"]) + params["b1"]
    h = jnp.maximum(bn(h, params["g1"], params["be1"]), 0.0)
    h = dot_bf16(h, params["w2"]) + params["b2"]
    h = jnp.maximum(bn(h, params["g2"], params["be2"]), 0.0)
    return dot_bf16(h, params["w3"]) + params["b3"]


if __name__ == "__main__":
    # Small shapes consistent with the module: input_dim=8, bn_size=4 -> 32 input
    # features, hidden_dim=32 (-> 16), num_domains=4. Batch of 256 rows so the
    # MXU M dimension is full on v6e/v7x (256x256 MXU) and 2x128 on v5e.
    input_dim, bn_size, hidden_dim, num_domains = 8, 4, 32, 4
    batch = 256
    in_features = input_dim * bn_size

    key = jax.random.PRNGKey(0)
    kx, kp = jax.random.split(key)
    x = jax.random.normal(kx, (batch, in_features), jnp.float32)
    raw_params = init_params(kp, in_features, hidden_dim, num_domains)

    forward = build_discriminator(raw_params, batch, x_dtype=x.dtype)
    out = jax.block_until_ready(forward(x))

    ref = reference_forward(x, raw_params)
    assert out.shape == (batch, num_domains)
    assert jnp.allclose(out, ref, atol=1e-2, rtol=1e-2), "mismatch vs reference"

    print("KERNEL_OK")
</pallas_src>

<mosaic_0001>
module attributes {stable_mosaic.version = 11 : i64} {
  func.func @discriminator_kernel(%arg0: memref<256x32xf32, #tpu.memory_space<vmem>>, %arg1: memref<32x128xbf16, #tpu.memory_space<vmem>>, %arg2: memref<1x128xf32, #tpu.memory_space<vmem>>, %arg3: memref<1x128xf32, #tpu.memory_space<vmem>>, %arg4: memref<128x128xbf16, #tpu.memory_space<vmem>>, %arg5: memref<1x128xf32, #tpu.memory_space<vmem>>, %arg6: memref<1x128xf32, #tpu.memory_space<vmem>>, %arg7: memref<128x128xbf16, #tpu.memory_space<vmem>>, %arg8: memref<1x128xf32, #tpu.memory_space<vmem>>, %arg9: memref<256x128xf32, #tpu.memory_space<vmem>>) attributes {dimension_semantics = [], scalar_prefetch = 0 : i64, scratch_operands = 0 : i64, tpu.core_type = #tpu.core_type<tc>} {
    %c0 = arith.constant 0 : index
    %c0_0 = arith.constant 0 : index
    %0 = vector.load %arg0[%c0, %c0_0] : memref<256x32xf32, #tpu.memory_space<vmem>>, vector<256x32xf32>
    %1 = arith.truncf %0 : vector<256x32xf32> to vector<256x32xbf16>
    %c0_1 = arith.constant 0 : index
    %c0_2 = arith.constant 0 : index
    %2 = vector.load %arg1[%c0_1, %c0_2] : memref<32x128xbf16, #tpu.memory_space<vmem>>, vector<32x128xbf16>
    %cst = arith.constant dense<0.000000e+00> : vector<256x128xf32>
    %3 = tpu.matmul %1, %2, %cst {dimension_numbers = #tpu.dot_dimension_numbers<[1], [0], [0], [1], [0, 0, 1, 1], [], []>} : vector<256x32xbf16>, vector<32x128xbf16>, vector<256x128xf32> -> vector<256x128xf32>
    %c0_3 = arith.constant 0 : index
    %c0_4 = arith.constant 0 : index
    %4 = vector.load %arg2[%c0_3, %c0_4] : memref<1x128xf32, #tpu.memory_space<vmem>>, vector<1x128xf32>
    %c0_5 = arith.constant 0 : index
    %c0_6 = arith.constant 0 : index
    %5 = vector.load %arg3[%c0_5, %c0_6] : memref<1x128xf32, #tpu.memory_space<vmem>>, vector<1x128xf32>
    %cst_7 = arith.constant dense<0.000000e+00> : vector<128xf32>
    %6 = vector.multi_reduction <add>, %3, %cst_7 [0] : vector<256x128xf32> to vector<128xf32>
    %7 = vector.shape_cast %6 : vector<128xf32> to vector<1x128xf32>
    %cst_8 = arith.constant 3.906250e-03 : f32
    %8 = vector.broadcast %cst_8 : f32 to vector<1x128xf32>
    %9 = arith.mulf %7, %8 : vector<1x128xf32>
    %10 = vector.broadcast %9 : vector<1x128xf32> to vector<256x128xf32>
    %11 = arith.subf %3, %10 : vector<256x128xf32>
    %12 = arith.mulf %11, %11 : vector<256x128xf32>
    %cst_9 = arith.constant dense<0.000000e+00> : vector<128xf32>
    %13 = vector.multi_reduction <add>, %12, %cst_9 [0] : vector<256x128xf32> to vector<128xf32>
    %14 = vector.shape_cast %13 : vector<128xf32> to vector<1x128xf32>
    %cst_10 = arith.constant 3.906250e-03 : f32
    %15 = vector.broadcast %cst_10 : f32 to vector<1x128xf32>
    %16 = arith.mulf %14, %15 : vector<1x128xf32>
    %cst_11 = arith.constant 9.99999974E-6 : f32
    %17 = vector.broadcast %cst_11 : f32 to vector<1x128xf32>
    %18 = arith.addf %16, %17 : vector<1x128xf32>
    %19 = math.rsqrt %18 : vector<1x128xf32>
    %20 = vector.broadcast %19 : vector<1x128xf32> to vector<256x128xf32>
    %21 = arith.mulf %11, %20 : vector<256x128xf32>
    %22 = vector.broadcast %4 : vector<1x128xf32> to vector<256x128xf32>
    %23 = arith.mulf %21, %22 : vector<256x128xf32>
    %24 = vector.broadcast %5 : vector<1x128xf32> to vector<256x128xf32>
    %25 = arith.addf %23, %24 : vector<256x128xf32>
    %cst_12 = arith.constant 0.000000e+00 : f32
    %26 = vector.broadcast %cst_12 : f32 to vector<256x128xf32>
    %27 = arith.maximumf %25, %26 : vector<256x128xf32>
    %28 = arith.truncf %27 : vector<256x128xf32> to vector<256x128xbf16>
    %c0_13 = arith.constant 0 : index
    %c0_14 = arith.constant 0 : index
    %29 = vector.load %arg4[%c0_13, %c0_14] : memref<128x128xbf16, #tpu.memory_space<vmem>>, vector<128x128xbf16>
    %cst_15 = arith.constant dense<0.000000e+00> : vector<256x128xf32>
    %30 = tpu.matmul %28, %29, %cst_15 {dimension_numbers = #tpu.dot_dimension_numbers<[1], [0], [0], [1], [0, 0, 1, 1], [], []>} : vector<256x128xbf16>, vector<128x128xbf16>, vector<256x128xf32> -> vector<256x128xf32>
    %c0_16 = arith.constant 0 : index
    %c0_17 = arith.constant 0 : index
    %31 = vector.load %arg5[%c0_16, %c0_17] : memref<1x128xf32, #tpu.memory_space<vmem>>, vector<1x128xf32>
    %c0_18 = arith.constant 0 : index
    %c0_19 = arith.constant 0 : index
    %32 = vector.load %arg6[%c0_18, %c0_19] : memref<1x128xf32, #tpu.memory_space<vmem>>, vector<1x128xf32>
    %cst_20 = arith.constant dense<0.000000e+00> : vector<128xf32>
    %33 = vector.multi_reduction <add>, %30, %cst_20 [0] : vector<256x128xf32> to vector<128xf32>
    %34 = vector.shape_cast %33 : vector<128xf32> to vector<1x128xf32>
    %cst_21 = arith.constant 3.906250e-03 : f32
    %35 = vector.broadcast %cst_21 : f32 to vector<1x128xf32>
    %36 = arith.mulf %34, %35 : vector<1x128xf32>
    %37 = vector.broadcast %36 : vector<1x128xf32> to vector<256x128xf32>
    %38 = arith.subf %30, %37 : vector<256x128xf32>
    %39 = arith.mulf %38, %38 : vector<256x128xf32>
    %cst_22 = arith.constant dense<0.000000e+00> : vector<128xf32>
    %40 = vector.multi_reduction <add>, %39, %cst_22 [0] : vector<256x128xf32> to vector<128xf32>
    %41 = vector.shape_cast %40 : vector<128xf32> to vector<1x128xf32>
    %cst_23 = arith.constant 3.906250e-03 : f32
    %42 = vector.broadcast %cst_23 : f32 to vector<1x128xf32>
    %43 = arith.mulf %41, %42 : vector<1x128xf32>
    %cst_24 = arith.constant 9.99999974E-6 : f32
    %44 = vector.broadcast %cst_24 : f32 to vector<1x128xf32>
    %45 = arith.addf %43, %44 : vector<1x128xf32>
    %46 = math.rsqrt %45 : vector<1x128xf32>
    %47 = vector.broadcast %46 : vector<1x128xf32> to vector<256x128xf32>
    %48 = arith.mulf %38, %47 : vector<256x128xf32>
    %49 = vector.broadcast %31 : vector<1x128xf32> to vector<256x128xf32>
    %50 = arith.mulf %48, %49 : vector<256x128xf32>
    %51 = vector.broadcast %32 : vector<1x128xf32> to vector<256x128xf32>
    %52 = arith.addf %50, %51 : vector<256x128xf32>
    %cst_25 = arith.constant 0.000000e+00 : f32
    %53 = vector.broadcast %cst_25 : f32 to vector<256x128xf32>
    %54 = arith.maximumf %52, %53 : vector<256x128xf32>
    %55 = arith.truncf %54 : vector<256x128xf32> to vector<256x128xbf16>
    %c0_26 = arith.constant 0 : index
    %c0_27 = arith.constant 0 : index
    %56 = vector.load %arg7[%c0_26, %c0_27] : memref<128x128xbf16, #tpu.memory_space<vmem>>, vector<128x128xbf16>
    %cst_28 = arith.constant dense<0.000000e+00> : vector<256x128xf32>
    %57 = tpu.matmul %55, %56, %cst_28 {dimension_numbers = #tpu.dot_dimension_numbers<[1], [0], [0], [1], [0, 0, 1, 1], [], []>} : vector<256x128xbf16>, vector<128x128xbf16>, vector<256x128xf32> -> vector<256x128xf32>
    %c0_29 = arith.constant 0 : index
    %c0_30 = arith.constant 0 : index
    %58 = vector.load %arg8[%c0_29, %c0_30] : memref<1x128xf32, #tpu.memory_space<vmem>>, vector<1x128xf32>
    %59 = vector.broadcast %58 : vector<1x128xf32> to vector<256x128xf32>
    %60 = arith.addf %57, %59 : vector<256x128xf32>
    %c0_31 = arith.constant 0 : index
    %c0_32 = arith.constant 0 : index
    %61 = vector.load %arg9[%c0_31, %c0_32] : memref<256x128xf32, #tpu.memory_space<vmem>>, vector<256x128xf32>
    tpu.vector_store %arg9[%c0_31, %c0_32], %60 {strides = array<i32>} : memref<256x128xf32, #tpu.memory_space<vmem>>, vector<256x128xf32>,
    return
  }
}

</mosaic_0001>

<bundles_post_ra>
// kernel: forward.1
= control target key start
LH: loop header
LB: loop body
LE: loop exit
PB: predicated region body
PF: predicated region fallthrough
CT: control target
= control target key end

     0   :  { %vm97_vm0 = vcmask 261120   ;;  %s2872_s1 = inlined_call_operand.vmem [shape: bf16[32,128], index: 1, kind: input, shape index: {}]   ;;  %s2873_s0 = inlined_call_operand.vmem [shape: f32[256,32], index: 0, kind: input, shape index: {}]   ;;  %s2874_s4 = inlined_call_operand.vmem [shape: bf16[128,128], index: 4, kind: input, shape index: {}]   ;;  %s2875_s2 = inlined_call_operand.vmem [shape: f32[1,128], index: 2, kind: input, shape index: {}, may-alias: {2,5}]   ;;  %s2876_s3 = inlined_call_operand.vmem [shape: f32[1,128], index: 3, kind: input, shape index: {}, may-alias: {3,6}]   ;;  %s2877_s7 = inlined_call_operand.vmem [shape: bf16[128,128], index: 7, kind: input, shape index: {}]   ;;  %s2878_s5 = inlined_call_operand.vmem [shape: f32[1,128], index: 5, kind: input, shape index: {}, may-alias: {2,5}]   ;;  %s2879_s6 = inlined_call_operand.vmem [shape: f32[1,128], index: 6, kind: input, shape index: {}, may-alias: {3,6}]   ;;  %s2880_s8 = inlined_call_operand.vmem [shape: f32[1,128], index: 8, kind: input, shape index: {}]   ;;  %s2881_s9 = inlined_call_operand.vmem [shape: f32[256,128], index: 9, kind: output, shape index: {}]  }
   0x1   :  { %v1641_v0 = vld [vmem:[%s2872_s1 + $0x8] sm:$0xff]   ;;  %v1642_v1 = vld [vmem:[%s2872_s1] sm:$0xff]   ;;  %v35_v5 = vld [vmem:[%s2873_s0 + $0x10] sm:$0xff] }
   0x2   :  { %1505 = vmatprep.subr.bf16.mxu0 %v1641_v0  ;;  %v33_v2 = vld [vmem:[%s2873_s0] sm:$0xff]  ;;  %v34_v3 = vld [vmem:[%s2873_s0 + $0x8] sm:$0xff]  ;;  %1637 = vmatprep.subr.bf16.mxu1 %v1641_v0  ;;  %v36_v6 = vld [vmem:[%s2873_s0 + $0x18] sm:$0xff] }
   0x3   :  { %1506 = vmatpush3.bf16.msra.mxu0 %v1641_v0  ;;  %v65_v4 = vpack.c.bf16 %v34_v3, %v33_v2  ;;  %1639 = vmatpush3.bf16.msra.mxu1 %v1641_v0  ;;  %v37_v7 = vld [vmem:[%s2873_s0 + $0x20] sm:$0xff]  ;;  %v38_v8 = vld [vmem:[%s2873_s0 + $0x28] sm:$0xff]  ;;  %v66_v9 = vpack.c.bf16 %v36_v6, %v35_v5  ;;  %v51_v14 = vld [vmem:[%s2873_s0 + $0x90] sm:$0xff] }
   0x4   :  { %1507 = vmatprep.subr.bf16.mxu0 %v1642_v1  ;;  %1638 = vmatprep.subr.bf16.mxu1 %v1642_v1  ;;  %v67_v10 = vpack.c.bf16 %v38_v8, %v37_v7  ;;  %v49_v11 = vld [vmem:[%s2873_s0 + $0x80] sm:$0xff]  ;;  %v50_v12 = vld [vmem:[%s2873_s0 + $0x88] sm:$0xff]  ;;  %v52_v15 = vld [vmem:[%s2873_s0 + $0x98] sm:$0xff] }
   0x5   :  { %1509 = vmatprep.mubr.msk.bf16.mxu0 %vm97_vm0, %v65_v4  ;;  %v73_v13 = vpack.c.bf16 %v50_v12, %v49_v11  ;;  %v53_v16 = vld [vmem:[%s2873_s0 + $0xa0] sm:$0xff]  ;;  %v74_v17 = vpack.c.bf16 %v52_v15, %v51_v14  ;;  %v54_v18 = vld [vmem:[%s2873_s0 + $0xa8] sm:$0xff]  ;;  %v39_v20 = vld [vmem:[%s2873_s0 + $0x30] sm:$0xff] }
   0x6   :  { %v75_v19 = vpack.c.bf16 %v54_v18, %v53_v16  ;;  %v40_v21 = vld [vmem:[%s2873_s0 + $0x38] sm:$0xff]  ;;  %v41_v22 = vld [vmem:[%s2873_s0 + $0x40] sm:$0xff]  ;;  %v42_v23 = vld [vmem:[%s2873_s0 + $0x48] sm:$0xff] }
   0x7   :  { %1508 = vmatpush3.bf16.msra.mxu0 %v1642_v1  ;;  %1640 = vmatpush3.bf16.msra.mxu1 %v1642_v1  ;;  %v55_v24 = vld [vmem:[%s2873_s0 + $0xb0] sm:$0xff]  ;;  %v56_v25 = vld [vmem:[%s2873_s0 + $0xb8] sm:$0xff]  ;;  %v57_v26 = vld [vmem:[%s2873_s0 + $0xc0] sm:$0xff]  ;;  %v68_v28 = vpack.c.bf16 %v40_v21, %v39_v20  ;;  %v69_v29 = vpack.c.bf16 %v42_v23, %v41_v22 }
   0x8   :  { %1525 = vmatprep.mubr.msk.bf16.mxu1 %vm97_vm0, %v73_v13  ;;  %v58_v27 = vld [vmem:[%s2873_s0 + $0xc8] sm:$0xff]  ;;  %v76_v30 = vpack.c.bf16 %v56_v25, %v55_v24  ;;  %v43_v32 = vld [vmem:[%s2873_s0 + $0x50] sm:$0xff]  ;;  %v44_v33 = vld [vmem:[%s2873_s0 + $0x58] sm:$0xff] }
   0x9   :  { %v77_v31 = vpack.c.bf16 %v58_v27, %v57_v26  ;;  %v45_v34 = vld [vmem:[%s2873_s0 + $0x60] sm:$0xff]  ;;  %v46_v35 = vld [vmem:[%s2873_s0 + $0x68] sm:$0xff]  ;;  %v59_v36 = vld [vmem:[%s2873_s0 + $0xd0] sm:$0xff]  ;;  %v70_v40 = vpack.c.bf16 %v44_v33, %v43_v32 }
   0xa   :  { %1510 = vmatmul.mubr.msk.bf16.vlgmr.msra.gmra.mxu0 %vm97_vm0, %v66_v9  ;;  %1526 = vmatmul.mubr.msk.bf16.vlgmr.msra.gmra.mxu1 %vm97_vm0, %v74_v17  ;;  %v60_v37 = vld [vmem:[%s2873_s0 + $0xd8] sm:$0xff]  ;;  %v61_v38 = vld [vmem:[%s2873_s0 + $0xe0] sm:$0xff]  ;;  %v62_v39 = vld [vmem:[%s2873_s0 + $0xe8] sm:$0xff]  ;;  %v71_v41 = vpack.c.bf16 %v46_v35, %v45_v34 }
   0xb   :  { %1513 = vmatprep.mubr.msk.bf16.mxu0 %vm97_vm0, %v67_v10  ;;  %1529 = vmatprep.mubr.msk.bf16.mxu1 %vm97_vm0, %v75_v19  ;;  %v78_v42 = vpack.c.bf16 %v60_v37, %v59_v36  ;;  %v79_v43 = vpack.c.bf16 %v62_v39, %v61_v38  ;;  %v47_v44 = vld [vmem:[%s2873_s0 + $0x70] sm:$0xff]  ;;  %v48_v45 = vld [vmem:[%s2873_s0 + $0x78] sm:$0xff] }
   0xc   :  { %v63_v46 = vld [vmem:[%s2873_s0 + $0xf0] sm:$0xff]  ;;  %v64_v47 = vld [vmem:[%s2873_s0 + $0xf8] sm:$0xff]  ;;  %v72_v48 = vpack.c.bf16 %v48_v45, %v47_v44 }
   0xd   :  { %v80_v49 = vpack.c.bf16 %v64_v47, %v63_v46  ;;  %v1643_v39 = vld [vmem:[%s2874_s4 + $0x38] sm:$0xff]   ;;  %v1645_v47 = vld [vmem:[%s2874_s4 + $0x28] sm:$0xff]  }
   0xe   :  { %1541 = vmatprep.subr.bf16.mxu1 %v1643_v39 }
   0xf   :  { %1542 = vmatpush3.bf16.msra.mxu1 %v1643_v39 }
  0x12   :  { %1514 = vmatmul.mubr.msk.bf16.gmra.mxu0 %vm97_vm0, %v68_v28  ;;  %1530 = vmatmul.mubr.msk.bf16.gmra.mxu1 %vm97_vm0, %v76_v30 }
  0x13   :  { %1517 = vmatprep.mubr.msk.bf16.mxu0 %vm97_vm0, %v69_v29  ;;  %1533 = vmatprep.mubr.msk.bf16.mxu1 %vm97_vm0, %v77_v31 }
  0x1a   :  { %1518 = vmatmul.mubr.msk.bf16.gmra.mxu0 %vm97_vm0, %v70_v40  ;;  %1534 = vmatmul.mubr.msk.bf16.gmra.mxu1 %vm97_vm0, %v78_v42 }
  0x1b   :  { %1521 = vmatprep.mubr.msk.bf16.mxu0 %vm97_vm0, %v71_v41  ;;  %1537 = vmatprep.mubr.msk.bf16.mxu1 %vm97_vm0, %v79_v43  ;;  %v1644_v43 = vld [vmem:[%s2874_s4 + $0x30] sm:$0xff]  }
  0x1c   :  { %1543 = vmatprep.subr.bf16.mxu1 %v1644_v43 }
  0x1d   :  { %1544 = vmatpush3.bf16.msra.mxu1 %v1644_v43 }
  0x1e   :  { %1545 = vmatprep.subr.bf16.mxu1 %v1645_v47 }
  0x21   :  { %1546 = vmatpush3.bf16.msra.mxu1 %v1645_v47 }
  0x22   :  { %1522 = vmatmul.mubr.msk.bf16.gmra.mxu0 %vm97_vm0, %v72_v48  ;;  %1538 = vmatmul.mubr.msk.bf16.gmra.mxu1 %vm97_vm0, %v80_v49 }
  0xca   :  { %v1831_v50 = vpop.f32.mrf.mxu0  ;;  %v1835_v52 = vpop.f32.mrf.mxu1 }
  0xcc   :  { %v1833_v51 = vpop.f32.mrf.mxu0  ;;  %v1841_v55 = vpop.f32.mrf.mxu1 }
  0xce   :  { %v1837_v53 = vpop.f32.mrf.mxu0  ;;  %v1850_v60 = vpop.f32.mrf.mxu1 }
  0xd0   :  { %v1839_v54 = vpop.f32.mrf.mxu0  ;;  %v1858_v1 = vpop.f32.mrf.mxu1 }
  0xd1   :  { %v309_v56 = vadd.f32 %v1839_v54, %v1833_v51 }
  0xd2   :  { %v1845_v57 = vpop.f32.mrf.mxu0  ;;  %v1866_v6 = vpop.f32.mrf.mxu1 }
  0xd3   :  { %v310_v58 = vadd.f32 %v1831_v50, %v309_v56 }
  0xd4   :  { %v1848_v59 = vpop.f32.mrf.mxu0  ;;  %v1874_v11 = vpop.f32.mrf.mxu1 }
  0xd5   :  { %v311_v61 = vadd.f32 %v1837_v53, %v310_v58  ;;  %v1646_v58 = vld [vmem:[%s2874_s4 + $0x20] sm:$0xff]  }
  0xd6   :  { %v1853_v62 = vpop.f32.mrf.mxu0  ;;  %v1882_v16 = vpop.f32.mrf.mxu1  ;;  %1547 = vmatprep.subr.bf16.mxu1 %v1646_v58 }
  0xd7   :  { %v312_v63 = vadd.f32 %v311_v61, %v1848_v59  ;;  %1548 = vmatpush3.bf16.msra.mxu1 %v1646_v58 }
  0xd8   :  { %v1856_v0 = vpop.f32.mrf.mxu0  ;;  %v1890_v21 = vpop.f32.mrf.mxu1 }
  0xd9   :  { %v313_v2 = vadd.f32 %v312_v63, %v1856_v0 }
  0xda   :  { %v1861_v3 = vpop.f32.mrf.mxu0  ;;  %v1894_v24 = vpop.f32.mrf.mxu1 }
  0xdb   :  { %v314_v4 = vadd.f32 %v1845_v57, %v313_v2  ;;  %v1647_v2 = vld [vmem:[%s2874_s4 + $0x18] sm:$0xff]  }
  0xdc   :  { %v1864_v5 = vpop.f32.mrf.mxu0  ;;  %v1898_v27 = vpop.f32.mrf.mxu1  ;;  %1549 = vmatprep.subr.bf16.mxu1 %v1647_v2 }
  0xdd   :  { %v315_v7 = vadd.f32 %v1853_v62, %v314_v4  ;;  %1550 = vmatpush3.bf16.msra.mxu1 %v1647_v2 }
  0xde   :  { %v1869_v8 = vpop.f32.mrf.mxu0  ;;  %v1902_v30 = vpop.f32.mrf.mxu1 }
  0xdf   :  { %v316_v9 = vadd.f32 %v315_v7, %v1864_v5 }
  0xe0   :  { %v1872_v10 = vpop.f32.mrf.mxu0  ;;  %v1906_v33 = vpop.f32.mrf.mxu1 }
  0xe1   :  { %v317_v12 = vadd.f32 %v316_v9, %v1872_v10  ;;  %v1648_v9 = vld [vmem:[%s2874_s4 + $0x10] sm:$0xff]  }
  0xe2   :  { %v1877_v13 = vpop.f32.mrf.mxu0  ;;  %v1910_v36 = vpop.f32.mrf.mxu1  ;;  %1551 = vmatprep.subr.bf16.mxu1 %v1648_v9 }
  0xe3   :  { %v318_v14 = vadd.f32 %v1861_v3, %v317_v12  ;;  %1552 = vmatpush3.bf16.msra.mxu1 %v1648_v9 }
  0xe4   :  { %v1880_v15 = vpop.f32.mrf.mxu0  ;;  %v1917_v40 = vpop.f32.mrf.mxu1 }
  0xe5   :  { %v319_v17 = vadd.f32 %v1869_v8, %v318_v14  ;;  %v1649_v14 = vld [vmem:[%s2874_s4 + $0x8] sm:$0xff]  }
  0xe6   :  { %v1885_v18 = vpop.f32.mrf.mxu0  ;;  %v1924_v44 = vpop.f32.mrf.mxu1  ;;  %1553 = vmatprep.subr.bf16.mxu1 %v1649_v14 }
  0xe7   :  { %v320_v19 = vadd.f32 %v319_v17, %v1880_v15  ;;  %1554 = vmatpush3.bf16.msra.mxu1 %v1649_v14 }
  0xe8   :  { %v1888_v20 = vpop.f32.mrf.mxu0  ;;  %v1931_v48 = vpop.f32.mrf.mxu1 }
  0xe9   :  { %v321_v22 = vadd.f32 %v320_v19, %v1888_v20  ;;  %v1650_v19 = vld [vmem:[%s2874_s4] sm:$0xff]  }
  0xea   :  { %1555 = vmatprep.subr.bf16.mxu1 %v1650_v19 }
  0xeb   :  { %v322_v23 = vadd.f32 %v1877_v13, %v321_v22  ;;  %1556 = vmatpush3.bf16.msra.mxu1 %v1650_v19 }
  0xed   :  { %v323_v25 = vadd.f32 %v1885_v18, %v322_v23 }
  0xef   :  { %v324_v26 = vadd.f32 %v323_v25, %v1841_v55 }
  0xf1   :  { %v325_v28 = vadd.f32 %v324_v26, %v1858_v1 }
  0xf3   :  { %v326_v29 = vadd.f32 %v1835_v52, %v325_v28 }
  0xf5   :  { %v327_v31 = vadd.f32 %v1850_v60, %v326_v29 }
  0xf7   :  { %v328_v32 = vadd.f32 %v327_v31, %v1874_v11 }
  0xf9   :  { %v329_v34 = vadd.f32 %v328_v32, %v1890_v21 }
  0xfb   :  { %v330_v35 = vadd.f32 %v1866_v6, %v329_v34 }
  0xfd   :  { %v331_v37 = vadd.f32 %v1882_v16, %v330_v35 }
  0xff   :  { %v332_v38 = vadd.f32 %v331_v37, %v1898_v27 }
 0x101   :  { %v333_v41 = vadd.f32 %v332_v38, %v1906_v33 }
 0x103   :  { %v334_v42 = vadd.f32 %v1894_v24, %v333_v41 }
 0x105   :  { %v335_v45 = vadd.f32 %v1902_v30, %v334_v42 }
 0x107   :  { %v336_v46 = vadd.f32 %v335_v45, %v1917_v40 }
 0x109   :  { %v337_v49 = vadd.f32 %v336_v46, %v1931_v48 }
 0x10b   :  { %v338_v56 = vadd.f32 %v1910_v36, %v337_v49 }
 0x10d   :  { %v339_v61 = vadd.f32 %v1924_v44, %v338_v56 }
 0x10f   :  { %v340_v63 = vrot.slane %v339_v61, 4 }
 0x111   :  { %v341_v4 = vadd.f32 %v340_v63, %v339_v61 }
 0x113   :  { %v342_v7 = vrot.slane %v341_v4, 2 }
 0x115   :  { %v343_v12 = vadd.f32 %v342_v7, %v341_v4 }
 0x117   :  { %v344_v17 = vrot.slane %v343_v12, 1 }
 0x119   :  { %v345_v22 = vadd.f32 %v344_v17, %v343_v12 }
 0x11b   :  { %v1951_v23 = vmul.f32 0.00390625, %v345_v22 }
 0x11d   :  { %v1955_v25 = vsub.f32 %v1833_v51, %v1951_v23  ;;  %v1959_v26 = vsub.f32 %v1839_v54, %v1951_v23  ;;  %v1963_v28 = vsub.f32 %v1831_v50, %v1951_v23  ;;  %v1971_v32 = vsub.f32 %v1837_v53, %v1951_v23 }
 0x11e   :  { %v1975_v51 = vsub.f32 %v1848_v59, %v1951_v23  ;;  %v1981_v50 = vsub.f32 %v1856_v0, %v1951_v23  ;;  %v1987_v53 = vsub.f32 %v1845_v57, %v1951_v23  ;;  %v1993_v39 = vsub.f32 %v1853_v62, %v1951_v23 }
 0x11f   :  { %v379_v29 = vmul.f32 %v1955_v25, %v1955_v25  ;;  %v380_v31 = vmul.f32 %v1959_v26, %v1959_v26  ;;  %v381_v54 = vmul.f32 %v1963_v28, %v1963_v28  ;;  %v382_v35 = vmul.f32 %v1971_v32, %v1971_v32 }
 0x120   :  { %v383_v59 = vmul.f32 %v1975_v51, %v1975_v51  ;;  %v384_v0 = vmul.f32 %v1981_v50, %v1981_v50  ;;  %v1999_v42 = vsub.f32 %v1864_v5, %v1951_v23  ;;  %v385_v57 = vmul.f32 %v1987_v53, %v1987_v53 }
 0x121   :  { %v411_v34 = vadd.f32 %v380_v31, %v379_v29  ;;  %v2005_v45 = vsub.f32 %v1872_v10, %v1951_v23  ;;  %v386_v62 = vmul.f32 %v1993_v39, %v1993_v39  ;;  %v2011_v47 = vsub.f32 %v1861_v3, %v1951_v23 }
 0x122   :  { %v387_v5 = vmul.f32 %v1999_v42, %v1999_v42  ;;  %v2017_v56 = vsub.f32 %v1869_v8, %v1951_v23  ;;  %v2023_v61 = vsub.f32 %v1880_v15, %v1951_v23  ;;  %v2029_v2 = vsub.f32 %v1888_v20, %v1951_v23 }
 0x123   :  { %v412_v37 = vadd.f32 %v411_v34, %v381_v54  ;;  %v388_v10 = vmul.f32 %v2005_v45, %v2005_v45  ;;  %v389_v3 = vmul.f32 %v2011_v47, %v2011_v47  ;;  %v2035_v7 = vsub.f32 %v1877_v13, %v1951_v23 }
 0x124   :  { %v390_v8 = vmul.f32 %v2017_v56, %v2017_v56  ;;  %v391_v15 = vmul.f32 %v2023_v61, %v2023_v61  ;;  %v2041_v12 = vsub.f32 %v1885_v18, %v1951_v23  ;;  %v392_v20 = vmul.f32 %v2029_v2, %v2029_v2 }
 0x125   :  { %v413_v38 = vadd.f32 %v412_v37, %v382_v35  ;;  %v2047_v17 = vsub.f32 %v1841_v55, %v1951_v23  ;;  %v393_v13 = vmul.f32 %v2035_v7, %v2035_v7  ;;  %v2053_v22 = vsub.f32 %v1858_v1, %v1951_v23 }
 0x126   :  { %v394_v18 = vmul.f32 %v2041_v12, %v2041_v12  ;;  %v2059_v31 = vsub.f32 %v1835_v52, %v1951_v23  ;;  %v2065_v34 = vsub.f32 %v1850_v60, %v1951_v23  ;;  %v2071_v37 = vsub.f32 %v1874_v11, %v1951_v23 }
 0x127   :  { %v414_v41 = vadd.f32 %v413_v38, %v383_v59  ;;  %v395_v55 = vmul.f32 %v2047_v17, %v2047_v17  ;;  %v396_v1 = vmul.f32 %v2053_v22, %v2053_v22  ;;  %v2077_v38 = vsub.f32 %v1890_v21, %v1951_v23 }
 0x128   :  { %v397_v52 = vmul.f32 %v2059_v31, %v2059_v31  ;;  %v398_v60 = vmul.f32 %v2065_v34, %v2065_v34  ;;  %v399_v11 = vmul.f32 %v2071_v37, %v2071_v37 }
 0x129   :  { %v415_v43 = vadd.f32 %v414_v41, %v384_v0  ;;  %v2083_v41 = vsub.f32 %v1866_v6, %v1951_v23  ;;  %v400_v21 = vmul.f32 %v2077_v38, %v2077_v38 }
 0x12b   :  { %v416_v46 = vadd.f32 %v415_v43, %v385_v57  ;;  %v2089_v43 = vsub.f32 %v1882_v16, %v1951_v23  ;;  %v401_v6 = vmul.f32 %v2083_v41, %v2083_v41 }
 0x12d   :  { %v417_v49 = vadd.f32 %v416_v46, %v386_v62  ;;  %v2095_v46 = vsub.f32 %v1898_v27, %v1951_v23  ;;  %v402_v16 = vmul.f32 %v2089_v43, %v2089_v43 }
 0x12f   :  { %v418_v58 = vadd.f32 %v417_v49, %v387_v5  ;;  %v2101_v49 = vsub.f32 %v1906_v33, %v1951_v23  ;;  %v403_v27 = vmul.f32 %v2095_v46, %v2095_v46 }
 0x131   :  { %v419_v63 = vadd.f32 %v418_v58, %v388_v10  ;;  %v2107_v58 = vsub.f32 %v1894_v24, %v1951_v23  ;;  %v404_v33 = vmul.f32 %v2101_v49, %v2101_v49 }
 0x133   :  { %v420_v4 = vadd.f32 %v419_v63, %v389_v3  ;;  %v2113_v63 = vsub.f32 %v1902_v30, %v1951_v23  ;;  %v405_v24 = vmul.f32 %v2107_v58, %v2107_v58 }
 0x135   :  { %v421_v9 = vadd.f32 %v420_v4, %v390_v8  ;;  %v2119_v4 = vsub.f32 %v1917_v40, %v1951_v23  ;;  %v406_v30 = vmul.f32 %v2113_v63, %v2113_v63 }
 0x137   :  { %v422_v14 = vadd.f32 %v421_v9, %v391_v15  ;;  %v2125_v9 = vsub.f32 %v1931_v48, %v1951_v23  ;;  %v407_v40 = vmul.f32 %v2119_v4, %v2119_v4 }
 0x139   :  { %v423_v19 = vadd.f32 %v422_v14, %v392_v20  ;;  %v2131_v14 = vsub.f32 %v1910_v36, %v1951_v23  ;;  %v408_v48 = vmul.f32 %v2125_v9, %v2125_v9 }
 0x13b   :  { %v424_v29 = vadd.f32 %v423_v19, %v393_v13  ;;  %v2137_v19 = vsub.f32 %v1924_v44, %v1951_v23 }
 0x13d   :  { %v425_v54 = vadd.f32 %v424_v29, %v394_v18  ;;  %v409_v29 = vmul.f32 %v2131_v14, %v2131_v14  ;;  %v410_v36 = vmul.f32 %v2137_v19, %v2137_v19 }
 0x13f   :  { %v426_v35 = vadd.f32 %v425_v54, %v395_v55 }
 0x141   :  { %v427_v59 = vadd.f32 %v426_v35, %v396_v1 }
 0x143   :  { %v428_v0 = vadd.f32 %v427_v59, %v397_v52 }
 0x145   :  { %v429_v57 = vadd.f32 %v428_v0, %v398_v60 }
 0x147   :  { %v430_v62 = vadd.f32 %v429_v57, %v399_v11 }
 0x149   :  { %v431_v5 = vadd.f32 %v430_v62, %v400_v21 }
 0x14b   :  { %v432_v10 = vadd.f32 %v431_v5, %v401_v6 }
 0x14d   :  { %v433_v3 = vadd.f32 %v432_v10, %v402_v16  ;;  %v2158_v16 = vld [vmem:[%s2875_s2] ss:$0 sm:$0xff] }
 0x14f   :  { %v434_v8 = vadd.f32 %v433_v3, %v403_v27 }
 0x151   :  { %v435_v15 = vadd.f32 %v434_v8, %v404_v33 }
 0x153   :  { %v436_v20 = vadd.f32 %v435_v15, %v405_v24 }
 0x155   :  { %v437_v13 = vadd.f32 %v436_v20, %v406_v30 }
 0x157   :  { %v438_v18 = vadd.f32 %v437_v13, %v407_v40 }
 0x159   :  { %v439_v55 = vadd.f32 %v438_v18, %v408_v48 }
 0x15b   :  { %v440_v54 = vadd.f32 %v439_v55, %v409_v29 }
 0x15d   :  { %v441_v1 = vadd.f32 %v440_v54, %v410_v36 }
 0x15f   :  { %v442_v35 = vrot.slane %v441_v1, 4 }
 0x161   :  { %v443_v52 = vadd.f32 %v442_v35, %v441_v1 }
 0x163   :  { %v444_v59 = vrot.slane %v443_v52, 2 }
 0x165   :  { %v445_v60 = vadd.f32 %v444_v59, %v443_v52 }
 0x167   :  { %v446_v0 = vrot.slane %v445_v60, 1 }
 0x169   :  { %v447_v44 = vadd.f32 %v446_v0, %v445_v60 }
 0x16b   :  { %v448_v23 = vmul.f32 0.00390625, %v447_v44 }
 0x16d   :  { %v449_v11 = vadd.f32 1e-05, %v448_v23 }
 0x16f   :  { %1659 = vrsqrt.f32 %v449_v11 }
 0x17c   :  { %v2145_v57 = vpop.eup %1659 }
 0x17d   :  { %v451_v21 = vmul.f32 %v2145_v57, %v1955_v25  ;;  %v452_v62 = vmul.f32 %v2145_v57, %v1959_v26  ;;  %v453_v6 = vmul.f32 %v2145_v57, %v1963_v28  ;;  %v454_v5 = vmul.f32 %v2145_v57, %v1971_v32 }
 0x17e   :  { %v455_v10 = vmul.f32 %v2145_v57, %v1975_v51  ;;  %v456_v25 = vmul.f32 %v2145_v57, %v1981_v50  ;;  %v457_v26 = vmul.f32 %v2145_v57, %v1987_v53  ;;  %v458_v28 = vmul.f32 %v2145_v57, %v1993_v39  ;;  %v2175_v51 = vld [vmem:[%s2876_s3] ss:$0 sm:$0xff] }
 0x17f   :  { %v489_v27 = vmul.f32 %v2158_v16, %v451_v21  ;;  %v490_v32 = vmul.f32 %v2158_v16, %v452_v62  ;;  %v491_v3 = vmul.f32 %v2158_v16, %v453_v6  ;;  %v492_v33 = vmul.f32 %v2158_v16, %v454_v5 }
 0x180   :  { %v459_v50 = vmul.f32 %v2145_v57, %v1999_v42  ;;  %v460_v53 = vmul.f32 %v2145_v57, %v2005_v45  ;;  %v493_v39 = vmul.f32 %v2158_v16, %v455_v10  ;;  %v494_v8 = vmul.f32 %v2158_v16, %v456_v25 }
 0x181   :  { %v495_v24 = vmul.f32 %v2158_v16, %v457_v26  ;;  %v496_v15 = vmul.f32 %v2158_v16, %v458_v28  ;;  %v529_v30 = vadd.f32 %v2175_v51, %v491_v3  ;;  %v530_v20 = vadd.f32 %v2175_v51, %v492_v33 }
 0x182   :  { %v527_v40 = vadd.f32 %v2175_v51, %v489_v27  ;;  %v528_v13 = vadd.f32 %v2175_v51, %v490_v32  ;;  %v497_v42 = vmul.f32 %v2158_v16, %v459_v50  ;;  %v498_v45 = vmul.f32 %v2158_v16, %v460_v53 }
 0x183   :  { %v531_v48 = vadd.f32 %v2175_v51, %v493_v39  ;;  %v532_v18 = vadd.f32 %v2175_v51, %v494_v8  ;;  %v561_v29 = vmax.f32 %v529_v30, 0.0  ;;  %v562_v55 = vmax.f32 %v530_v20, 0.0 }
 0x184   :  { %v559_v36 = vmax.f32 %v527_v40, 0.0  ;;  %v560_v54 = vmax.f32 %v528_v13, 0.0  ;;  %v461_v52 = vmul.f32 %v2145_v57, %v2011_v47  ;;  %v462_v0 = vmul.f32 %v2145_v57, %v2017_v56 }
 0x185   :  { %v563_v1 = vmax.f32 %v531_v48, 0.0  ;;  %v564_v35 = vmax.f32 %v532_v18, 0.0  ;;  %v592_v59 = vpack.c.bf16 %v562_v55, %v561_v29  ;;  %v463_v44 = vmul.f32 %v2145_v57, %v2023_v61 }
 0x186   :  { %v591_v60 = vpack.c.bf16 %v560_v54, %v559_v36  ;;  %v533_v23 = vadd.f32 %v2175_v51, %v495_v24  ;;  %v534_v11 = vadd.f32 %v2175_v51, %v496_v15  ;;  %v464_v21 = vmul.f32 %v2145_v57, %v2029_v2 }
 0x187   :  { %v593_v62 = vpack.c.bf16 %v564_v35, %v563_v1  ;;  %v535_v6 = vadd.f32 %v2175_v51, %v497_v42  ;;  %v536_v47 = vadd.f32 %v2175_v51, %v498_v45  ;;  %v499_v56 = vmul.f32 %v2158_v16, %v461_v52 }
 0x188   :  { %1557 = vmatprep.mubr.bf16.mxu1 %v591_v60  ;;  %v500_v5 = vmul.f32 %v2158_v16, %v462_v0  ;;  %v565_v61 = vmax.f32 %v533_v23, 0.0  ;;  %v566_v10 = vmax.f32 %v534_v11, 0.0  ;;  %v501_v25 = vmul.f32 %v2158_v16, %v463_v44 }
 0x189   :  { %1558 = vmatmul.mubr.bf16.vlgmr.msra.gmra.mxu1 %v592_v59  ;;  %v502_v26 = vmul.f32 %v2158_v16, %v464_v21  ;;  %v567_v28 = vmax.f32 %v535_v6, 0.0  ;;  %v568_v2 = vmax.f32 %v536_v47, 0.0  ;;  %v465_v27 = vmul.f32 %v2145_v57, %v2035_v7 }
 0x18a   :  { %1561 = vmatprep.mubr.bf16.mxu1 %v593_v62  ;;  %v466_v32 = vmul.f32 %v2145_v57, %v2041_v12  ;;  %v467_v3 = vmul.f32 %v2145_v57, %v2047_v17  ;;  %v594_v33 = vpack.c.bf16 %v566_v10, %v565_v61  ;;  %v537_v50 = vadd.f32 %v2175_v51, %v499_v56 }
 0x18b   :  { %v538_v53 = vadd.f32 %v2175_v51, %v500_v5  ;;  %v468_v39 = vmul.f32 %v2145_v57, %v2053_v22  ;;  %v595_v8 = vpack.c.bf16 %v568_v2, %v567_v28  ;;  %v539_v24 = vadd.f32 %v2175_v51, %v501_v25 }
 0x18c   :  { %v540_v15 = vadd.f32 %v2175_v51, %v502_v26  ;;  %v503_v7 = vmul.f32 %v2158_v16, %v465_v27  ;;  %v504_v12 = vmul.f32 %v2158_v16, %v466_v32  ;;  %v569_v17 = vmax.f32 %v537_v50, 0.0 }
 0x18d   :  { %v570_v30 = vmax.f32 %v538_v53, 0.0  ;;  %v505_v20 = vmul.f32 %v2158_v16, %v467_v3  ;;  %v506_v40 = vmul.f32 %v2158_v16, %v468_v39  ;;  %v571_v13 = vmax.f32 %v539_v24, 0.0 }
 0x18e   :  { %v572_v42 = vmax.f32 %v540_v15, 0.0  ;;  %v469_v22 = vmul.f32 %v2145_v57, %v2059_v31  ;;  %v470_v45 = vmul.f32 %v2145_v57, %v2065_v34  ;;  %v471_v48 = vmul.f32 %v2145_v57, %v2071_v37 }
 0x18f   :  { %v596_v18 = vpack.c.bf16 %v570_v30, %v569_v17  ;;  %v541_v29 = vadd.f32 %v2175_v51, %v503_v7  ;;  %v542_v55 = vadd.f32 %v2175_v51, %v504_v12  ;;  %v472_v36 = vmul.f32 %v2145_v57, %v2077_v38 }
 0x190   :  { %v597_v54 = vpack.c.bf16 %v572_v42, %v571_v13  ;;  %v543_v1 = vadd.f32 %v2175_v51, %v505_v20  ;;  %v544_v35 = vadd.f32 %v2175_v51, %v506_v40  ;;  %v507_v31 = vmul.f32 %v2158_v16, %v469_v22 }
 0x191   :  { %1562 = vmatmul.mubr.bf16.gmra.mxu1 %v594_v33  ;;  %v508_v34 = vmul.f32 %v2158_v16, %v470_v45  ;;  %v573_v37 = vmax.f32 %v541_v29, 0.0  ;;  %v574_v52 = vmax.f32 %v542_v55, 0.0  ;;  %v509_v59 = vmul.f32 %v2158_v16, %v471_v48 }
 0x192   :  { %1565 = vmatprep.mubr.bf16.mxu1 %v595_v8  ;;  %v510_v60 = vmul.f32 %v2158_v16, %v472_v36  ;;  %v575_v0 = vmax.f32 %v543_v1, 0.0  ;;  %v576_v44 = vmax.f32 %v544_v35, 0.0  ;;  %v473_v38 = vmul.f32 %v2145_v57, %v2083_v41 }
 0x193   :  { %v474_v23 = vmul.f32 %v2145_v57, %v2089_v43  ;;  %v475_v11 = vmul.f32 %v2145_v57, %v2095_v46  ;;  %v598_v21 = vpack.c.bf16 %v574_v52, %v573_v37  ;;  %v545_v62 = vadd.f32 %v2175_v51, %v507_v31 }
 0x194   :  { %v546_v6 = vadd.f32 %v2175_v51, %v508_v34  ;;  %v476_v47 = vmul.f32 %v2145_v57, %v2101_v49  ;;  %v599_v56 = vpack.c.bf16 %v576_v44, %v575_v0  ;;  %v547_v5 = vadd.f32 %v2175_v51, %v509_v59 }
 0x195   :  { %v548_v61 = vadd.f32 %v2175_v51, %v510_v60  ;;  %v511_v41 = vmul.f32 %v2158_v16, %v473_v38  ;;  %v512_v43 = vmul.f32 %v2158_v16, %v474_v23  ;;  %v577_v46 = vmax.f32 %v545_v62, 0.0 }
 0x196   :  { %v578_v10 = vmax.f32 %v546_v6, 0.0  ;;  %v513_v25 = vmul.f32 %v2158_v16, %v475_v11  ;;  %v514_v26 = vmul.f32 %v2158_v16, %v476_v47  ;;  %v579_v28 = vmax.f32 %v547_v5, 0.0 }
 0x197   :  { %v580_v2 = vmax.f32 %v548_v61, 0.0  ;;  %v480_v49 = vmul.f32 %v2145_v57, %v2125_v9  ;;  %v477_v27 = vmul.f32 %v2145_v57, %v2107_v58  ;;  %v478_v32 = vmul.f32 %v2145_v57, %v2113_v63 }
 0x198   :  { %v600_v3 = vpack.c.bf16 %v578_v10, %v577_v46  ;;  %v549_v33 = vadd.f32 %v2175_v51, %v511_v41  ;;  %v550_v50 = vadd.f32 %v2175_v51, %v512_v43  ;;  %v479_v53 = vmul.f32 %v2145_v57, %v2119_v4 }
 0x199   :  { %1566 = vmatmul.mubr.bf16.gmra.mxu1 %v596_v18  ;;  %v601_v39 = vpack.c.bf16 %v580_v2, %v579_v28  ;;  %v551_v8 = vadd.f32 %v2175_v51, %v513_v25  ;;  %v552_v24 = vadd.f32 %v2175_v51, %v514_v26  ;;  %v515_v58 = vmul.f32 %v2158_v16, %v477_v27 }
 0x19a   :  { %1569 = vmatprep.mubr.bf16.mxu1 %v597_v54  ;;  %v516_v9 = vmul.f32 %v2158_v16, %v478_v32  ;;  %v581_v63 = vmax.f32 %v549_v33, 0.0  ;;  %v582_v15 = vmax.f32 %v550_v50, 0.0  ;;  %v518_v7 = vmul.f32 %v2158_v16, %v480_v49 }
 0x19b   :  { %v517_v12 = vmul.f32 %v2158_v16, %v479_v53  ;;  %v583_v17 = vmax.f32 %v551_v8, 0.0  ;;  %v584_v30 = vmax.f32 %v552_v24, 0.0  ;;  %v481_v4 = vmul.f32 %v2145_v57, %v2131_v14 }
 0x19c   :  { %v482_v20 = vmul.f32 %v2145_v57, %v2137_v19  ;;  %v602_v40 = vpack.c.bf16 %v582_v15, %v581_v63  ;;  %v553_v13 = vadd.f32 %v2175_v51, %v515_v58  ;;  %v554_v42 = vadd.f32 %v2175_v51, %v516_v9 }
 0x19d   :  { %v603_v22 = vpack.c.bf16 %v584_v30, %v583_v17  ;;  %v555_v45 = vadd.f32 %v2175_v51, %v517_v12  ;;  %v556_v48 = vadd.f32 %v2175_v51, %v518_v7  ;;  %v519_v18 = vmul.f32 %v2158_v16, %v481_v4 }
 0x19e   :  { %v520_v29 = vmul.f32 %v2158_v16, %v482_v20  ;;  %v585_v14 = vmax.f32 %v553_v13, 0.0  ;;  %v586_v55 = vmax.f32 %v554_v42, 0.0 }
 0x19f   :  { %v587_v36 = vmax.f32 %v555_v45, 0.0  ;;  %v588_v19 = vmax.f32 %v556_v48, 0.0  ;;  %v557_v54 = vadd.f32 %v2175_v51, %v519_v18  ;;  %v1651_v18 = vld [vmem:[%s2877_s7 + $0x38] sm:$0xff]  }
 0x1a0   :  { %v604_v57 = vpack.c.bf16 %v586_v55, %v585_v14  ;;  %v558_v1 = vadd.f32 %v2175_v51, %v520_v29  ;;  %1589 = vmatprep.subr.bf16.mxu0 %v1651_v18 }
 0x1a1   :  { %1570 = vmatmul.mubr.bf16.gmra.mxu1 %v598_v21  ;;  %v605_v35 = vpack.c.bf16 %v588_v19, %v587_v36  ;;  %v589_v31 = vmax.f32 %v557_v54, 0.0  ;;  %1590 = vmatpush3.bf16.msra.mxu0 %v1651_v18  ;;  %v1652_v19 = vld [vmem:[%s2877_s7 + $0x30] sm:$0xff]  }
 0x1a2   :  { %1573 = vmatprep.mubr.bf16.mxu1 %v599_v56  ;;  %v590_v34 = vmax.f32 %v558_v1, 0.0  ;;  %1591 = vmatprep.subr.bf16.mxu0 %v1652_v19 }
 0x1a4   :  { %v606_v37 = vpack.c.bf16 %v590_v34, %v589_v31  ;;  %v1653_v31 = vld [vmem:[%s2877_s7 + $0x28] sm:$0xff]  }
 0x1a5   :  { %1592 = vmatpush3.bf16.msra.mxu0 %v1652_v19 }
 0x1a6   :  { %1593 = vmatprep.subr.bf16.mxu0 %v1653_v31 }
 0x1a9   :  { %1574 = vmatmul.mubr.bf16.gmra.mxu1 %v600_v3  ;;  %1594 = vmatpush3.bf16.msra.mxu0 %v1653_v31 }
 0x1aa   :  { %1577 = vmatprep.mubr.bf16.mxu1 %v601_v39 }
 0x1b1   :  { %1578 = vmatmul.mubr.bf16.gmra.mxu1 %v602_v40 }
 0x1b2   :  { %1581 = vmatprep.mubr.bf16.mxu1 %v603_v22 }
 0x1b9   :  { %1582 = vmatmul.mubr.bf16.gmra.mxu1 %v604_v57 }
 0x1ba   :  { %1585 = vmatprep.mubr.bf16.mxu1 %v605_v35 }
 0x1c1   :  { %1586 = vmatmul.mubr.bf16.gmra.mxu1 %v606_v37 }
 0x249   :  { %v2285_v52 = vpop.f32.mrf.mxu1 }
 0x24b   :  { %v2287_v59 = vpop.f32.mrf.mxu1 }
 0x24d   :  { %v2289_v16 = vpop.f32.mrf.mxu1 }
 0x24f   :  { %v2291_v60 = vpop.f32.mrf.mxu1 }
 0x250   :  { %v834_v0 = vadd.f32 %v2291_v60, %v2287_v59 }
 0x251   :  { %v2295_v44 = vpop.f32.mrf.mxu1 }
 0x252   :  { %v835_v51 = vadd.f32 %v2285_v52, %v834_v0 }
 0x253   :  { %v2298_v38 = vpop.f32.mrf.mxu1 }
 0x254   :  { %v836_v23 = vadd.f32 %v2289_v16, %v835_v51  ;;  %v1654_v51 = vld [vmem:[%s2877_s7 + $0x20] sm:$0xff]  }
 0x255   :  { %v2301_v11 = vpop.f32.mrf.mxu1  ;;  %1595 = vmatprep.subr.bf16.mxu0 %v1654_v51 }
 0x256   :  { %v837_v21 = vadd.f32 %v836_v23, %v2298_v38  ;;  %1596 = vmatpush3.bf16.msra.mxu0 %v1654_v51 }
 0x257   :  { %v2304_v62 = vpop.f32.mrf.mxu1 }
 0x258   :  { %v838_v6 = vadd.f32 %v837_v21, %v2304_v62 }
 0x259   :  { %v2307_v47 = vpop.f32.mrf.mxu1 }
 0x25a   :  { %v839_v56 = vadd.f32 %v2295_v44, %v838_v6  ;;  %v1655_v6 = vld [vmem:[%s2877_s7 + $0x18] sm:$0xff]  }
 0x25b   :  { %v2310_v5 = vpop.f32.mrf.mxu1  ;;  %1597 = vmatprep.subr.bf16.mxu0 %v1655_v6 }
 0x25c   :  { %v840_v61 = vadd.f32 %v2301_v11, %v839_v56  ;;  %1598 = vmatpush3.bf16.msra.mxu0 %v1655_v6 }
 0x25d   :  { %v2313_v41 = vpop.f32.mrf.mxu1 }
 0x25e   :  { %v841_v43 = vadd.f32 %v840_v61, %v2310_v5 }
 0x25f   :  { %v2316_v46 = vpop.f32.mrf.mxu1 }
 0x260   :  { %v842_v10 = vadd.f32 %v841_v43, %v2316_v46  ;;  %v1656_v43 = vld [vmem:[%s2877_s7 + $0x10] sm:$0xff]  }
 0x261   :  { %v2319_v25 = vpop.f32.mrf.mxu1  ;;  %1599 = vmatprep.subr.bf16.mxu0 %v1656_v43 }
 0x262   :  { %v843_v26 = vadd.f32 %v2307_v47, %v842_v10  ;;  %1600 = vmatpush3.bf16.msra.mxu0 %v1656_v43 }
 0x263   :  { %v2322_v28 = vpop.f32.mrf.mxu1 }
 0x264   :  { %v844_v2 = vadd.f32 %v2313_v41, %v843_v26  ;;  %v1657_v26 = vld [vmem:[%s2877_s7 + $0x8] sm:$0xff]  }
 0x265   :  { %v2325_v49 = vpop.f32.mrf.mxu1  ;;  %1601 = vmatprep.subr.bf16.mxu0 %v1657_v26 }
 0x266   :  { %v845_v27 = vadd.f32 %v844_v2, %v2322_v28  ;;  %1602 = vmatpush3.bf16.msra.mxu0 %v1657_v26 }
 0x267   :  { %v2328_v32 = vpop.f32.mrf.mxu1 }
 0x268   :  { %v846_v3 = vadd.f32 %v845_v27, %v2328_v32  ;;  %v1658_v27 = vld [vmem:[%s2877_s7] sm:$0xff]  }
 0x269   :  { %v2331_v33 = vpop.f32.mrf.mxu1  ;;  %1603 = vmatprep.subr.bf16.mxu0 %v1658_v27 }
 0x26a   :  { %v847_v50 = vadd.f32 %v2319_v25, %v846_v3  ;;  %1604 = vmatpush3.bf16.msra.mxu0 %v1658_v27 }
 0x26b   :  { %v2334_v53 = vpop.f32.mrf.mxu1 }
 0x26c   :  { %v848_v39 = vadd.f32 %v2325_v49, %v847_v50 }
 0x26d   :  { %v2337_v8 = vpop.f32.mrf.mxu1 }
 0x26e   :  { %v849_v24 = vadd.f32 %v848_v39, %v2334_v53 }
 0x26f   :  { %v2340_v58 = vpop.f32.mrf.mxu1 }
 0x270   :  { %v850_v9 = vadd.f32 %v849_v24, %v2340_v58 }
 0x271   :  { %v2343_v63 = vpop.f32.mrf.mxu1 }
 0x272   :  { %v851_v15 = vadd.f32 %v2331_v33, %v850_v9 }
 0x273   :  { %v2346_v7 = vpop.f32.mrf.mxu1 }
 0x274   :  { %v852_v12 = vadd.f32 %v2337_v8, %v851_v15 }
 0x275   :  { %v2349_v17 = vpop.f32.mrf.mxu1 }
 0x276   :  { %v853_v30 = vadd.f32 %v852_v12, %v2346_v7 }
 0x277   :  { %v2352_v4 = vpop.f32.mrf.mxu1 }
 0x278   :  { %v854_v20 = vadd.f32 %v853_v30, %v2352_v4 }
 0x279   :  { %v2355_v40 = vpop.f32.mrf.mxu1 }
 0x27a   :  { %v855_v13 = vadd.f32 %v2343_v63, %v854_v20 }
 0x27b   :  { %v2358_v42 = vpop.f32.mrf.mxu1 }
 0x27c   :  { %v856_v22 = vadd.f32 %v2349_v17, %v855_v13 }
 0x27d   :  { %v2361_v45 = vpop.f32.mrf.mxu1 }
 0x27e   :  { %v857_v48 = vadd.f32 %v856_v22, %v2358_v42 }
 0x27f   :  { %v2367_v29 = vpop.f32.mrf.mxu1 }
 0x280   :  { %v858_v14 = vadd.f32 %v857_v48, %v2367_v29 }
 0x281   :  { %v2370_v55 = vpop.f32.mrf.mxu1 }
 0x282   :  { %v859_v36 = vadd.f32 %v2355_v40, %v858_v14 }
 0x283   :  { %v2376_v57 = vpop.f32.mrf.mxu1 }
 0x284   :  { %v860_v54 = vadd.f32 %v2361_v45, %v859_v36 }
 0x285   :  { %v2379_v1 = vpop.f32.mrf.mxu1 }
 0x286   :  { %v861_v35 = vadd.f32 %v860_v54, %v2376_v57 }
 0x287   :  { %v2385_v34 = vpop.f32.mrf.mxu1 }
 0x288   :  { %v862_v37 = vadd.f32 %v861_v35, %v2385_v34 }
 0x28a   :  { %v863_v0 = vadd.f32 %v2370_v55, %v862_v37 }
 0x28c   :  { %v864_v23 = vadd.f32 %v2379_v1, %v863_v0 }
 0x28e   :  { %v865_v21 = vrot.slane %v864_v23, 4 }
 0x290   :  { %v866_v56 = vadd.f32 %v865_v21, %v864_v23 }
 0x292   :  { %v867_v61 = vrot.slane %v866_v56, 2 }
 0x294   :  { %v868_v10 = vadd.f32 %v867_v61, %v866_v56 }
 0x296   :  { %v869_v2 = vrot.slane %v868_v10, 1 }
 0x298   :  { %v870_v3 = vadd.f32 %v869_v2, %v868_v10 }
 0x29a   :  { %v2405_v50 = vmul.f32 0.00390625, %v870_v3 }
 0x29c   :  { %v2409_v39 = vsub.f32 %v2287_v59, %v2405_v50  ;;  %v2413_v24 = vsub.f32 %v2291_v60, %v2405_v50  ;;  %v2417_v9 = vsub.f32 %v2285_v52, %v2405_v50  ;;  %v2425_v30 = vsub.f32 %v2289_v16, %v2405_v50 }
 0x29d   :  { %v2429_v59 = vsub.f32 %v2298_v38, %v2405_v50  ;;  %v2435_v52 = vsub.f32 %v2304_v62, %v2405_v50  ;;  %v2441_v16 = vsub.f32 %v2295_v44, %v2405_v50  ;;  %v2447_v18 = vsub.f32 %v2301_v11, %v2405_v50 }
 0x29e   :  { %v904_v15 = vmul.f32 %v2409_v39, %v2409_v39  ;;  %v905_v12 = vmul.f32 %v2413_v24, %v2413_v24  ;;  %v906_v60 = vmul.f32 %v2417_v9, %v2417_v9  ;;  %v907_v13 = vmul.f32 %v2425_v30, %v2425_v30 }
 0x29f   :  { %v908_v38 = vmul.f32 %v2429_v59, %v2429_v59  ;;  %v909_v62 = vmul.f32 %v2435_v52, %v2435_v52  ;;  %v2453_v36 = vsub.f32 %v2310_v5, %v2405_v50  ;;  %v910_v44 = vmul.f32 %v2441_v16, %v2441_v16 }
 0x2a0   :  { %v936_v20 = vadd.f32 %v905_v12, %v904_v15  ;;  %v2459_v54 = vsub.f32 %v2316_v46, %v2405_v50  ;;  %v911_v11 = vmul.f32 %v2447_v18, %v2447_v18  ;;  %v2465_v31 = vsub.f32 %v2307_v47, %v2405_v50 }
 0x2a1   :  { %v912_v5 = vmul.f32 %v2453_v36, %v2453_v36  ;;  %v2471_v0 = vsub.f32 %v2313_v41, %v2405_v50  ;;  %v2477_v23 = vsub.f32 %v2322_v28, %v2405_v50  ;;  %v2483_v6 = vsub.f32 %v2328_v32, %v2405_v50 }
 0x2a2   :  { %v937_v22 = vadd.f32 %v936_v20, %v906_v60  ;;  %v913_v46 = vmul.f32 %v2459_v54, %v2459_v54  ;;  %v914_v47 = vmul.f32 %v2465_v31, %v2465_v31  ;;  %v2489_v61 = vsub.f32 %v2319_v25, %v2405_v50 }
 0x2a3   :  { %v915_v41 = vmul.f32 %v2471_v0, %v2471_v0  ;;  %v916_v28 = vmul.f32 %v2477_v23, %v2477_v23  ;;  %v2495_v10 = vsub.f32 %v2325_v49, %v2405_v50  ;;  %v917_v32 = vmul.f32 %v2483_v6, %v2483_v6 }
 0x2a4   :  { %v938_v48 = vadd.f32 %v937_v22, %v907_v13  ;;  %v2501_v2 = vsub.f32 %v2334_v53, %v2405_v50  ;;  %v918_v25 = vmul.f32 %v2489_v61, %v2489_v61  ;;  %v2507_v3 = vsub.f32 %v2340_v58, %v2405_v50 }
 0x2a5   :  { %v919_v49 = vmul.f32 %v2495_v10, %v2495_v10  ;;  %v2513_v12 = vsub.f32 %v2331_v33, %v2405_v50  ;;  %v2519_v20 = vsub.f32 %v2337_v8, %v2405_v50  ;;  %v2525_v22 = vsub.f32 %v2346_v7, %v2405_v50 }
 0x2a6   :  { %v939_v14 = vadd.f32 %v938_v48, %v908_v38  ;;  %v920_v53 = vmul.f32 %v2501_v2, %v2501_v2  ;;  %v921_v58 = vmul.f32 %v2507_v3, %v2507_v3  ;;  %v2531_v48 = vsub.f32 %v2352_v4, %v2405_v50 }
 0x2a7   :  { %v922_v33 = vmul.f32 %v2513_v12, %v2513_v12  ;;  %v923_v8 = vmul.f32 %v2519_v20, %v2519_v20  ;;  %v924_v7 = vmul.f32 %v2525_v22, %v2525_v22 }
 0x2a8   :  { %v940_v19 = vadd.f32 %v939_v14, %v909_v62  ;;  %v2537_v14 = vsub.f32 %v2343_v63, %v2405_v50  ;;  %v925_v4 = vmul.f32 %v2531_v48, %v2531_v48 }
 0x2aa   :  { %v941_v35 = vadd.f32 %v940_v19, %v910_v44  ;;  %v2543_v19 = vsub.f32 %v2349_v17, %v2405_v50  ;;  %v926_v63 = vmul.f32 %v2537_v14, %v2537_v14 }
 0x2ac   :  { %v942_v37 = vadd.f32 %v941_v35, %v911_v11  ;;  %v2549_v35 = vsub.f32 %v2358_v42, %v2405_v50  ;;  %v927_v17 = vmul.f32 %v2543_v19, %v2543_v19 }
 0x2ae   :  { %v943_v51 = vadd.f32 %v942_v37, %v912_v5  ;;  %v2555_v37 = vsub.f32 %v2367_v29, %v2405_v50  ;;  %v928_v42 = vmul.f32 %v2549_v35, %v2549_v35 }
 0x2b0   :  { %v944_v21 = vadd.f32 %v943_v51, %v913_v46  ;;  %v2561_v51 = vsub.f32 %v2355_v40, %v2405_v50  ;;  %v929_v29 = vmul.f32 %v2555_v37, %v2555_v37 }
 0x2b2   :  { %v945_v56 = vadd.f32 %v944_v21, %v914_v47  ;;  %v2567_v21 = vsub.f32 %v2361_v45, %v2405_v50  ;;  %v930_v40 = vmul.f32 %v2561_v51, %v2561_v51 }
 0x2b4   :  { %v946_v43 = vadd.f32 %v945_v56, %v915_v41  ;;  %v2573_v56 = vsub.f32 %v2376_v57, %v2405_v50  ;;  %v931_v45 = vmul.f32 %v2567_v21, %v2567_v21 }
 0x2b6   :  { %v947_v26 = vadd.f32 %v946_v43, %v916_v28  ;;  %v2579_v43 = vsub.f32 %v2385_v34, %v2405_v50  ;;  %v932_v57 = vmul.f32 %v2573_v56, %v2573_v56 }
 0x2b8   :  { %v948_v27 = vadd.f32 %v947_v26, %v917_v32  ;;  %v2585_v26 = vsub.f32 %v2370_v55, %v2405_v50  ;;  %v933_v34 = vmul.f32 %v2579_v43, %v2579_v43 }
 0x2ba   :  { %v949_v15 = vadd.f32 %v948_v27, %v918_v25  ;;  %v2591_v27 = vsub.f32 %v2379_v1, %v2405_v50 }
 0x2bc   :  { %v950_v60 = vadd.f32 %v949_v15, %v919_v49  ;;  %v934_v15 = vmul.f32 %v2585_v26, %v2585_v26  ;;  %v935_v55 = vmul.f32 %v2591_v27, %v2591_v27 }
 0x2be   :  { %v951_v13 = vadd.f32 %v950_v60, %v920_v53 }
 0x2c0   :  { %v952_v38 = vadd.f32 %v951_v13, %v921_v58 }
 0x2c2   :  { %v953_v62 = vadd.f32 %v952_v38, %v922_v33 }
 0x2c4   :  { %v954_v44 = vadd.f32 %v953_v62, %v923_v8 }
 0x2c6   :  { %v955_v11 = vadd.f32 %v954_v44, %v924_v7 }
 0x2c8   :  { %v956_v5 = vadd.f32 %v955_v11, %v925_v4 }
 0x2ca   :  { %v957_v46 = vadd.f32 %v956_v5, %v926_v63 }
 0x2cc   :  { %v958_v47 = vadd.f32 %v957_v46, %v927_v17  ;;  %v2612_v17 = vld [vmem:[%s2878_s5] ss:$0 sm:$0xff] }
 0x2ce   :  { %v959_v41 = vadd.f32 %v958_v47, %v928_v42 }
 0x2d0   :  { %v960_v28 = vadd.f32 %v959_v41, %v929_v29 }
 0x2d2   :  { %v961_v32 = vadd.f32 %v960_v28, %v930_v40 }
 0x2d4   :  { %v962_v25 = vadd.f32 %v961_v32, %v931_v45 }
 0x2d6   :  { %v963_v49 = vadd.f32 %v962_v25, %v932_v57 }
 0x2d8   :  { %v964_v53 = vadd.f32 %v963_v49, %v933_v34 }
 0x2da   :  { %v965_v60 = vadd.f32 %v964_v53, %v934_v15 }
 0x2dc   :  { %v966_v58 = vadd.f32 %v965_v60, %v935_v55 }
 0x2de   :  { %v967_v13 = vrot.slane %v966_v58, 4 }
 0x2e0   :  { %v968_v33 = vadd.f32 %v967_v13, %v966_v58 }
 0x2e2   :  { %v969_v38 = vrot.slane %v968_v33, 2 }
 0x2e4   :  { %v970_v8 = vadd.f32 %v969_v38, %v968_v33 }
 0x2e6   :  { %v971_v62 = vrot.slane %v970_v8, 1 }
 0x2e8   :  { %v972_v1 = vadd.f32 %v971_v62, %v970_v8 }
 0x2ea   :  { %v973_v50 = vmul.f32 0.00390625, %v972_v1 }
 0x2ec   :  { %v974_v7 = vadd.f32 1e-05, %v973_v50 }
 0x2ee   :  { %1661 = vrsqrt.f32 %v974_v7 }
 0x2fb   :  { %v2599_v44 = vpop.eup %1661 }
 0x2fc   :  { %v976_v4 = vmul.f32 %v2599_v44, %v2409_v39  ;;  %v977_v11 = vmul.f32 %v2599_v44, %v2413_v24  ;;  %v978_v63 = vmul.f32 %v2599_v44, %v2417_v9  ;;  %v979_v5 = vmul.f32 %v2599_v44, %v2425_v30 }
 0x2fd   :  { %v980_v46 = vmul.f32 %v2599_v44, %v2429_v59  ;;  %v981_v39 = vmul.f32 %v2599_v44, %v2435_v52  ;;  %v982_v24 = vmul.f32 %v2599_v44, %v2441_v16  ;;  %v983_v9 = vmul.f32 %v2599_v44, %v2447_v18  ;;  %v2629_v59 = vld [vmem:[%s2879_s6] ss:$0 sm:$0xff] }
 0x2fe   :  { %v1014_v42 = vmul.f32 %v2612_v17, %v976_v4  ;;  %v1015_v30 = vmul.f32 %v2612_v17, %v977_v11  ;;  %v1016_v47 = vmul.f32 %v2612_v17, %v978_v63  ;;  %v1017_v29 = vmul.f32 %v2612_v17, %v979_v5 }
 0x2ff   :  { %v984_v52 = vmul.f32 %v2599_v44, %v2453_v36  ;;  %v985_v16 = vmul.f32 %v2599_v44, %v2459_v54  ;;  %v1018_v18 = vmul.f32 %v2612_v17, %v980_v46  ;;  %v1019_v41 = vmul.f32 %v2612_v17, %v981_v39 }
 0x300   :  { %v1020_v40 = vmul.f32 %v2612_v17, %v982_v24  ;;  %v1021_v28 = vmul.f32 %v2612_v17, %v983_v9  ;;  %v1054_v45 = vadd.f32 %v2629_v59, %v1016_v47  ;;  %v1055_v32 = vadd.f32 %v2629_v59, %v1017_v29 }
 0x301   :  { %v1052_v57 = vadd.f32 %v2629_v59, %v1014_v42  ;;  %v1053_v25 = vadd.f32 %v2629_v59, %v1015_v30  ;;  %v1022_v36 = vmul.f32 %v2612_v17, %v984_v52  ;;  %v1023_v54 = vmul.f32 %v2612_v17, %v985_v16 }
 0x302   :  { %v1056_v34 = vadd.f32 %v2629_v59, %v1018_v18  ;;  %v1057_v49 = vadd.f32 %v2629_v59, %v1019_v41  ;;  %v1086_v15 = vmax.f32 %v1054_v45, 0.0  ;;  %v1087_v53 = vmax.f32 %v1055_v32, 0.0 }
 0x303   :  { %v1084_v55 = vmax.f32 %v1052_v57, 0.0  ;;  %v1085_v60 = vmax.f32 %v1053_v25, 0.0  ;;  %v986_v33 = vmul.f32 %v2599_v44, %v2465_v31  ;;  %v987_v62 = vmul.f32 %v2599_v44, %v2471_v0 }
 0x304   :  { %v1088_v58 = vmax.f32 %v1056_v34, 0.0  ;;  %v1089_v13 = vmax.f32 %v1057_v49, 0.0  ;;  %v1117_v38 = vpack.c.bf16 %v1087_v53, %v1086_v15  ;;  %v988_v1 = vmul.f32 %v2599_v44, %v2477_v23 }
 0x305   :  { %v1116_v8 = vpack.c.bf16 %v1085_v60, %v1084_v55  ;;  %v1058_v50 = vadd.f32 %v2629_v59, %v1020_v40  ;;  %v1059_v7 = vadd.f32 %v2629_v59, %v1021_v28  ;;  %v989_v4 = vmul.f32 %v2599_v44, %v2483_v6 }
 0x306   :  { %v1118_v11 = vpack.c.bf16 %v1089_v13, %v1088_v58  ;;  %v1060_v63 = vadd.f32 %v2629_v59, %v1022_v36  ;;  %v1061_v31 = vadd.f32 %v2629_v59, %v1023_v54  ;;  %v1024_v0 = vmul.f32 %v2612_v17, %v986_v33 }
 0x307   :  { %1605 = vmatprep.mubr.bf16.mxu0 %v1116_v8  ;;  %v1025_v5 = vmul.f32 %v2612_v17, %v987_v62  ;;  %v1090_v23 = vmax.f32 %v1058_v50, 0.0  ;;  %v1091_v46 = vmax.f32 %v1059_v7, 0.0  ;;  %v1026_v39 = vmul.f32 %v2612_v17, %v988_v1 }
 0x308   :  { %1606 = vmatmul.mubr.bf16.vlgmr.msra.gmra.mxu0 %v1117_v38  ;;  %v1027_v24 = vmul.f32 %v2612_v17, %v989_v4  ;;  %v1092_v9 = vmax.f32 %v1060_v63, 0.0  ;;  %v1093_v6 = vmax.f32 %v1061_v31, 0.0  ;;  %v990_v42 = vmul.f32 %v2599_v44, %v2489_v61 }
 0x309   :  { %1609 = vmatprep.mubr.bf16.mxu0 %v1118_v11  ;;  %v991_v30 = vmul.f32 %v2599_v44, %v2495_v10  ;;  %v992_v47 = vmul.f32 %v2599_v44, %v2501_v2  ;;  %v1119_v29 = vpack.c.bf16 %v1091_v46, %v1090_v23  ;;  %v1062_v52 = vadd.f32 %v2629_v59, %v1024_v0 }
 0x30a   :  { %v1063_v16 = vadd.f32 %v2629_v59, %v1025_v5  ;;  %v993_v18 = vmul.f32 %v2599_v44, %v2507_v3  ;;  %v1120_v41 = vpack.c.bf16 %v1093_v6, %v1092_v9  ;;  %v1064_v40 = vadd.f32 %v2629_v59, %v1026_v39 }
 0x30b   :  { %v1065_v28 = vadd.f32 %v2629_v59, %v1027_v24  ;;  %v1028_v61 = vmul.f32 %v2612_v17, %v990_v42  ;;  %v1029_v10 = vmul.f32 %v2612_v17, %v991_v30  ;;  %v1094_v2 = vmax.f32 %v1062_v52, 0.0 }
 0x30c   :  { %v1095_v45 = vmax.f32 %v1063_v16, 0.0  ;;  %v1030_v32 = vmul.f32 %v2612_v17, %v992_v47  ;;  %v1031_v57 = vmul.f32 %v2612_v17, %v993_v18  ;;  %v1096_v25 = vmax.f32 %v1064_v40, 0.0 }
 0x30d   :  { %v1097_v36 = vmax.f32 %v1065_v28, 0.0  ;;  %v994_v3 = vmul.f32 %v2599_v44, %v2513_v12  ;;  %v995_v54 = vmul.f32 %v2599_v44, %v2519_v20  ;;  %v996_v34 = vmul.f32 %v2599_v44, %v2525_v22 }
 0x30e   :  { %v1121_v49 = vpack.c.bf16 %v1095_v45, %v1094_v2  ;;  %v1066_v15 = vadd.f32 %v2629_v59, %v1028_v61  ;;  %v1067_v53 = vadd.f32 %v2629_v59, %v1029_v10  ;;  %v997_v55 = vmul.f32 %v2599_v44, %v2531_v48 }
 0x30f   :  { %v1122_v60 = vpack.c.bf16 %v1097_v36, %v1096_v25  ;;  %v1068_v58 = vadd.f32 %v2629_v59, %v1030_v32  ;;  %v1069_v13 = vadd.f32 %v2629_v59, %v1031_v57  ;;  %v1032_v12 = vmul.f32 %v2612_v17, %v994_v3 }
 0x310   :  { %1610 = vmatmul.mubr.bf16.gmra.mxu0 %v1119_v29  ;;  %v1033_v20 = vmul.f32 %v2612_v17, %v995_v54  ;;  %v1098_v22 = vmax.f32 %v1066_v15, 0.0  ;;  %v1099_v33 = vmax.f32 %v1067_v53, 0.0  ;;  %v1034_v38 = vmul.f32 %v2612_v17, %v996_v34 }
 0x311   :  { %1613 = vmatprep.mubr.bf16.mxu0 %v1120_v41  ;;  %v1035_v8 = vmul.f32 %v2612_v17, %v997_v55  ;;  %v1100_v62 = vmax.f32 %v1068_v58, 0.0  ;;  %v1101_v1 = vmax.f32 %v1069_v13, 0.0  ;;  %v998_v48 = vmul.f32 %v2599_v44, %v2537_v14 }
 0x312   :  { %v999_v50 = vmul.f32 %v2599_v44, %v2543_v19  ;;  %v1000_v7 = vmul.f32 %v2599_v44, %v2549_v35  ;;  %v1123_v4 = vpack.c.bf16 %v1099_v33, %v1098_v22  ;;  %v1070_v11 = vadd.f32 %v2629_v59, %v1032_v12 }
 0x313   :  { %v1071_v63 = vadd.f32 %v2629_v59, %v1033_v20  ;;  %v1001_v31 = vmul.f32 %v2599_v44, %v2555_v37  ;;  %v1124_v0 = vpack.c.bf16 %v1101_v1, %v1100_v62  ;;  %v1072_v5 = vadd.f32 %v2629_v59, %v1034_v38 }
 0x314   :  { %v1073_v23 = vadd.f32 %v2629_v59, %v1035_v8  ;;  %v1036_v14 = vmul.f32 %v2612_v17, %v998_v48  ;;  %v1037_v19 = vmul.f32 %v2612_v17, %v999_v50  ;;  %v1102_v35 = vmax.f32 %v1070_v11, 0.0 }
 0x315   :  { %v1103_v46 = vmax.f32 %v1071_v63, 0.0  ;;  %v1038_v39 = vmul.f32 %v2612_v17, %v1000_v7  ;;  %v1039_v24 = vmul.f32 %v2612_v17, %v1001_v31  ;;  %v1104_v9 = vmax.f32 %v1072_v5, 0.0 }
 0x316   :  { %v1105_v6 = vmax.f32 %v1073_v23, 0.0  ;;  %v1005_v37 = vmul.f32 %v2599_v44, %v2579_v43  ;;  %v1002_v42 = vmul.f32 %v2599_v44, %v2561_v51  ;;  %v1003_v30 = vmul.f32 %v2599_v44, %v2567_v21 }
 0x317   :  { %v1125_v47 = vpack.c.bf16 %v1103_v46, %v1102_v35  ;;  %v1074_v29 = vadd.f32 %v2629_v59, %v1036_v14  ;;  %v1075_v52 = vadd.f32 %v2629_v59, %v1037_v19  ;;  %v1004_v16 = vmul.f32 %v2599_v44, %v2573_v56 }
 0x318   :  { %1614 = vmatmul.mubr.bf16.gmra.mxu0 %v1121_v49  ;;  %v1126_v18 = vpack.c.bf16 %v1105_v6, %v1104_v9  ;;  %v1076_v41 = vadd.f32 %v2629_v59, %v1038_v39  ;;  %v1077_v40 = vadd.f32 %v2629_v59, %v1039_v24  ;;  %v1040_v51 = vmul.f32 %v2612_v17, %v1002_v42 }
 0x319   :  { %1617 = vmatprep.mubr.bf16.mxu0 %v1122_v60  ;;  %v1041_v43 = vmul.f32 %v2612_v17, %v1003_v30  ;;  %v1106_v21 = vmax.f32 %v1074_v29, 0.0  ;;  %v1107_v28 = vmax.f32 %v1075_v52, 0.0  ;;  %v1043_v61 = vmul.f32 %v2612_v17, %v1005_v37 }
 0x31a   :  { %v1042_v10 = vmul.f32 %v2612_v17, %v1004_v16  ;;  %v1108_v2 = vmax.f32 %v1076_v41, 0.0  ;;  %v1109_v45 = vmax.f32 %v1077_v40, 0.0  ;;  %v1006_v56 = vmul.f32 %v2599_v44, %v2585_v26 }
 0x31b   :  { %v1007_v32 = vmul.f32 %v2599_v44, %v2591_v27  ;;  %v1127_v57 = vpack.c.bf16 %v1107_v28, %v1106_v21  ;;  %v1078_v25 = vadd.f32 %v2629_v59, %v1040_v51  ;;  %v1079_v36 = vadd.f32 %v2629_v59, %v1041_v43 }
 0x31c   :  { %v1128_v3 = vpack.c.bf16 %v1109_v45, %v1108_v2  ;;  %v1080_v54 = vadd.f32 %v2629_v59, %v1042_v10  ;;  %v1081_v34 = vadd.f32 %v2629_v59, %v1043_v61  ;;  %v1044_v49 = vmul.f32 %v2612_v17, %v1006_v56 }
 0x31d   :  { %v1045_v15 = vmul.f32 %v2612_v17, %v1007_v32  ;;  %v1110_v26 = vmax.f32 %v1078_v25, 0.0  ;;  %v1111_v53 = vmax.f32 %v1079_v36, 0.0  ;;  %v2742_v17 = vld [vmem:[%s2880_s8] ss:$0 sm:$0xff] }
 0x31e   :  { %v1112_v55 = vmax.f32 %v1080_v54, 0.0  ;;  %v1113_v27 = vmax.f32 %v1081_v34, 0.0  ;;  %v1082_v60 = vadd.f32 %v2629_v59, %v1044_v49 }
 0x31f   :  { %v1129_v44 = vpack.c.bf16 %v1111_v53, %v1110_v26  ;;  %v1083_v58 = vadd.f32 %v2629_v59, %v1045_v15 }
 0x320   :  { %1618 = vmatmul.mubr.bf16.gmra.mxu0 %v1123_v4  ;;  %v1130_v13 = vpack.c.bf16 %v1113_v27, %v1112_v55  ;;  %v1114_v12 = vmax.f32 %v1082_v60, 0.0 }
 0x321   :  { %1621 = vmatprep.mubr.bf16.mxu0 %v1124_v0  ;;  %v1115_v20 = vmax.f32 %v1083_v58, 0.0 }
 0x323   :  { %v1131_v22 = vpack.c.bf16 %v1115_v20, %v1114_v12 }
 0x328   :  { %1622 = vmatmul.mubr.bf16.gmra.mxu0 %v1125_v47 }
 0x329   :  { %1625 = vmatprep.mubr.bf16.mxu0 %v1126_v18 }
 0x330   :  { %1626 = vmatmul.mubr.bf16.gmra.mxu0 %v1127_v57 }
 0x331   :  { %1629 = vmatprep.mubr.bf16.mxu0 %v1128_v3 }
 0x338   :  { %1630 = vmatmul.mubr.bf16.gmra.mxu0 %v1129_v44 }
 0x339   :  { %1633 = vmatprep.mubr.bf16.mxu0 %v1130_v13 }
 0x340   :  { %1634 = vmatmul.mubr.bf16.gmra.mxu0 %v1131_v22 }
 0x3c8   :  { %v1607_v33 = vpop.f32.mrf.mxu0 }
 0x3c9   :  { %v1246_v38 = vadd.f32 %v1607_v33, %v2742_v17 }
 0x3ca   :  { %v1237_v8 = vpop.f32.mrf.mxu0 }
 0x3cb   :  { %1366 = vst [vmem:[%s2881_s9 + $0x10] sm:$0xff] %v1246_v38  ;;  %v1238_v59 = vadd.f32 %v2742_v17, %v1237_v8 }
 0x3cc   :  { %v1608_v62 = vpop.f32.mrf.mxu0 }
 0x3cd   :  { %1364 = vst [vmem:[%s2881_s9] sm:$0xff] %v1238_v59  ;;  %v1249_v1 = vadd.f32 %v1608_v62, %v2742_v17 }
 0x3ce   :  { %v1240_v48 = vpop.f32.mrf.mxu0 }
 0x3cf   :  { %1367 = vst [vmem:[%s2881_s9 + $0x18] sm:$0xff] %v1249_v1  ;;  %v1241_v50 = vadd.f32 %v2742_v17, %v1240_v48 }
 0x3d0   :  { %v1611_v7 = vpop.f32.mrf.mxu0 }
 0x3d1   :  { %1365 = vst [vmem:[%s2881_s9 + $0x8] sm:$0xff] %v1241_v50  ;;  %v1262_v4 = vadd.f32 %v1611_v7, %v2742_v17 }
 0x3d2   :  { %v1253_v11 = vpop.f32.mrf.mxu0 }
 0x3d3   :  { %1370 = vst [vmem:[%s2881_s9 + $0x30] sm:$0xff] %v1262_v4  ;;  %v1254_v63 = vadd.f32 %v2742_v17, %v1253_v11 }
 0x3d4   :  { %v1612_v31 = vpop.f32.mrf.mxu0 }
 0x3d5   :  { %1368 = vst [vmem:[%s2881_s9 + $0x20] sm:$0xff] %v1254_v63  ;;  %v1265_v0 = vadd.f32 %v1612_v31, %v2742_v17 }
 0x3d6   :  { %v1256_v5 = vpop.f32.mrf.mxu0 }
 0x3d7   :  { %1371 = vst [vmem:[%s2881_s9 + $0x38] sm:$0xff] %v1265_v0  ;;  %v1257_v23 = vadd.f32 %v2742_v17, %v1256_v5 }
 0x3d8   :  { %v1615_v14 = vpop.f32.mrf.mxu0 }
 0x3d9   :  { %1369 = vst [vmem:[%s2881_s9 + $0x28] sm:$0xff] %v1257_v23  ;;  %v1278_v19 = vadd.f32 %v1615_v14, %v2742_v17 }
 0x3da   :  { %v1269_v35 = vpop.f32.mrf.mxu0 }
 0x3db   :  { %1374 = vst [vmem:[%s2881_s9 + $0x50] sm:$0xff] %v1278_v19  ;;  %v1270_v46 = vadd.f32 %v2742_v17, %v1269_v35 }
 0x3dc   :  { %v1616_v39 = vpop.f32.mrf.mxu0 }
 0x3dd   :  { %1372 = vst [vmem:[%s2881_s9 + $0x40] sm:$0xff] %v1270_v46  ;;  %v1281_v24 = vadd.f32 %v1616_v39, %v2742_v17 }
 0x3de   :  { %v1272_v9 = vpop.f32.mrf.mxu0 }
 0x3df   :  { %1375 = vst [vmem:[%s2881_s9 + $0x58] sm:$0xff] %v1281_v24  ;;  %v1273_v6 = vadd.f32 %v2742_v17, %v1272_v9 }
 0x3e0   :  { %v1619_v37 = vpop.f32.mrf.mxu0 }
 0x3e1   :  { %1373 = vst [vmem:[%s2881_s9 + $0x48] sm:$0xff] %v1273_v6  ;;  %v1294_v42 = vadd.f32 %v1619_v37, %v2742_v17 }
 0x3e2   :  { %v1285_v30 = vpop.f32.mrf.mxu0 }
 0x3e3   :  { %1378 = vst [vmem:[%s2881_s9 + $0x70] sm:$0xff] %v1294_v42  ;;  %v1286_v47 = vadd.f32 %v2742_v17, %v1285_v30 }
 0x3e4   :  { %v1620_v29 = vpop.f32.mrf.mxu0 }
 0x3e5   :  { %1376 = vst [vmem:[%s2881_s9 + $0x60] sm:$0xff] %v1286_v47  ;;  %v1297_v52 = vadd.f32 %v1620_v29, %v2742_v17 }
 0x3e6   :  { %v1288_v16 = vpop.f32.mrf.mxu0 }
 0x3e7   :  { %1379 = vst [vmem:[%s2881_s9 + $0x78] sm:$0xff] %v1297_v52  ;;  %v1289_v18 = vadd.f32 %v2742_v17, %v1288_v16 }
 0x3e8   :  { %v1623_v41 = vpop.f32.mrf.mxu0 }
 0x3e9   :  { %1377 = vst [vmem:[%s2881_s9 + $0x68] sm:$0xff] %v1289_v18  ;;  %v1310_v40 = vadd.f32 %v1623_v41, %v2742_v17 }
 0x3ea   :  { %v1301_v51 = vpop.f32.mrf.mxu0 }
 0x3eb   :  { %1382 = vst [vmem:[%s2881_s9 + $0x90] sm:$0xff] %v1310_v40  ;;  %v1302_v43 = vadd.f32 %v2742_v17, %v1301_v51 }
 0x3ec   :  { %v1624_v21 = vpop.f32.mrf.mxu0 }
 0x3ed   :  { %1380 = vst [vmem:[%s2881_s9 + $0x80] sm:$0xff] %v1302_v43  ;;  %v1313_v28 = vadd.f32 %v1624_v21, %v2742_v17 }
 0x3ee   :  { %v1304_v61 = vpop.f32.mrf.mxu0 }
 0x3ef   :  { %1383 = vst [vmem:[%s2881_s9 + $0x98] sm:$0xff] %v1313_v28  ;;  %v1305_v10 = vadd.f32 %v2742_v17, %v1304_v61 }
 0x3f0   :  { %v1627_v2 = vpop.f32.mrf.mxu0 }
 0x3f1   :  { %1381 = vst [vmem:[%s2881_s9 + $0x88] sm:$0xff] %v1305_v10  ;;  %v1326_v45 = vadd.f32 %v1627_v2, %v2742_v17 }
 0x3f2   :  { %v1317_v56 = vpop.f32.mrf.mxu0 }
 0x3f3   :  { %1386 = vst [vmem:[%s2881_s9 + $0xb0] sm:$0xff] %v1326_v45  ;;  %v1318_v32 = vadd.f32 %v2742_v17, %v1317_v56 }
 0x3f4   :  { %v1628_v57 = vpop.f32.mrf.mxu0 }
 0x3f5   :  { %1384 = vst [vmem:[%s2881_s9 + $0xa0] sm:$0xff] %v1318_v32  ;;  %v1329_v25 = vadd.f32 %v1628_v57, %v2742_v17 }
 0x3f6   :  { %v1320_v36 = vpop.f32.mrf.mxu0 }
 0x3f7   :  { %1387 = vst [vmem:[%s2881_s9 + $0xb8] sm:$0xff] %v1329_v25  ;;  %v1321_v3 = vadd.f32 %v2742_v17, %v1320_v36 }
 0x3f8   :  { %v1631_v54 = vpop.f32.mrf.mxu0 }
 0x3f9   :  { %1385 = vst [vmem:[%s2881_s9 + $0xa8] sm:$0xff] %v1321_v3  ;;  %v1342_v34 = vadd.f32 %v1631_v54, %v2742_v17 }
 0x3fa   :  { %v1333_v49 = vpop.f32.mrf.mxu0 }
 0x3fb   :  { %1390 = vst [vmem:[%s2881_s9 + $0xd0] sm:$0xff] %v1342_v34  ;;  %v1334_v15 = vadd.f32 %v2742_v17, %v1333_v49 }
 0x3fc   :  { %v1632_v26 = vpop.f32.mrf.mxu0 }
 0x3fd   :  { %1388 = vst [vmem:[%s2881_s9 + $0xc0] sm:$0xff] %v1334_v15  ;;  %v1345_v53 = vadd.f32 %v1632_v26, %v2742_v17 }
 0x3fe   :  { %v1336_v55 = vpop.f32.mrf.mxu0 }
 0x3ff   :  { %1391 = vst [vmem:[%s2881_s9 + $0xd8] sm:$0xff] %v1345_v53  ;;  %v1337_v27 = vadd.f32 %v2742_v17, %v1336_v55 }
 0x400   :  { %v1635_v44 = vpop.f32.mrf.mxu0 }
 0x401   :  { %1389 = vst [vmem:[%s2881_s9 + $0xc8] sm:$0xff] %v1337_v27  ;;  %v1358_v60 = vadd.f32 %v1635_v44, %v2742_v17 }
 0x402   :  { %v1349_v58 = vpop.f32.mrf.mxu0 }
 0x403   :  { %1394 = vst [vmem:[%s2881_s9 + $0xf0] sm:$0xff] %v1358_v60  ;;  %v1350_v13 = vadd.f32 %v2742_v17, %v1349_v58 }
 0x404   :  { %v1636_v12 = vpop.f32.mrf.mxu0 }
 0x405   :  { %1392 = vst [vmem:[%s2881_s9 + $0xe0] sm:$0xff] %v1350_v13  ;;  %v1361_v20 = vadd.f32 %v1636_v12, %v2742_v17 }
 0x406   :  { %v1352_v22 = vpop.f32.mrf.mxu0 }
 0x407   :  { %1395 = vst [vmem:[%s2881_s9 + $0xf8] sm:$0xff] %v1361_v20  ;;  %v1353_v33 = vadd.f32 %v2742_v17, %v1352_v22 }
 0x409   :  { %1393 = vst [vmem:[%s2881_s9 + $0xe8] sm:$0xff] %v1353_v33 }

</bundles_post_ra>
